<compile_context>
chip_gen: v7x
topology: tpu7x:2x2x1
jax: 0.10.0
libtpu: 0.0.40
codegen_flags: <defaults>
</compile_context>

<pallas_src>
import functools

import jax
import jax.numpy as jnp
import numpy as np
from jax.experimental import pallas as pl
from jax.experimental.pallas import tpu as pltpu


def _sr_motion_gate_kernel(
    rel_ref,      # [M, T]   pairwise trace differences, row m = (b, p, l)
    hidp_ref,     # [M, H]   hidden_states[b, p, :] per row
    hidl_ref,     # [M, H]   hidden_states[b, l, :] per row
    cell_ref,     # [G, H]   cell_states, row j = (b, p), G = B*N
    wr1_ref, br1_ref,    # [T, 32],  [1, 32]
    wr2_ref, br2_ref,    # [32, 64], [1, 64]
    wr3_ref, br3_ref,    # [64, H],  [1, H]
    wug_ref,             # [3H, H+1] fused [g_fc | u_fc] weight (u_fc: no bias)
    bg_ref,              # [1, H]
    wct_ref,             # [H, H]    c_fc weight stored [in, out] (y = x @ W)
    out_ref,             # [G, H]
    *, n_ped, L,
):
    rel = rel_ref[...]
    hid_p = hidp_ref[...]
    hid_l = hidl_ref[...]
    cell = cell_ref[...]
    Wr1, br1 = wr1_ref[...], br1_ref[...]
    Wr2, br2 = wr2_ref[...], br2_ref[...]
    Wr3, br3 = wr3_ref[...], br3_ref[...]
    Wug = wug_ref[...]
    bg = bg_ref[...]
    WcT = wct_ref[...]

    M, T = rel.shape
    H = hid_p.shape[-1]
    G = M // n_ped                      # number of (batch, target-ped) groups

    def dot(a, b):                      # default precision -> single-pass MXU
        return jnp.dot(a, b, preferred_element_type=jnp.float32)

    # ---- cal_r: 3-layer MLP on relative locations, all (b,p,l) rows at once.
    # K == T is tiny, so layer 1 runs as VPU FMAs instead of an MXU dot.
    h1 = rel[:, 0:1] * Wr1[0:1, :]
    for t in range(1, T):
        h1 = h1 + rel[:, t:t + 1] * Wr1[t:t + 1, :]
    h1 = jax.nn.relu(h1 + br1)                               # [M, 32]
    h2 = jax.nn.relu(dot(h1, Wr2) + br2)                     # [M, 64]
    hloc = dot(h2, Wr3) + br3                                # [M, H]

    # ---- fused u/g projection of cat(hloc_l, h_p, h_l) ----------------------
    ug = (dot(hloc, Wug[0:H, :])
          + dot(hid_p, Wug[H:2 * H, :])
          + dot(hid_l, Wug[2 * H:3 * H, :]))                 # [M, H+1]
    g = 1.0 / (1.0 + jnp.exp(-(ug[:, 0:H] + bg)))            # sigmoid, [M, H]
    u = ug[:, H:H + 1]                                       # [M, 1]

    # ---- cal_alpha + alpha-weighted neighbour aggregation -------------------
    # exp with no max subtraction, exactly like the PyTorch module (fine for
    # small logits; fragile if production logits get large).
    eu = jnp.exp(u)                                          # [M, 1]
    # Group-sum selector S[j, m] = 1 iff row m belongs to group j = (b, p).
    col = jax.lax.broadcasted_iota(jnp.int32, (G, M), 1)
    row = jax.lax.broadcasted_iota(jnp.int32, (G, M), 0)
    S = jnp.where((col >= row * n_ped) & (col < row * n_ped + n_ped), 1.0, 0.0)
    num = dot(S, eu * (g * hid_l))                           # [G, H] Σ_l e^u·g·h_l
    den = dot(S, eu)                                         # [G, 1] Σ_l e^u
    weighted = num / den                                     # = Σ_l α · g · h_l

    # ---- c_fc + residual -----------------------------------------------------
    # NOTE: delta depends only on traces / hidden states (not on the evolving
    # cell state), so the reference's L outer iterations collapse to +L*delta.
    delta = dot(weighted, WcT)                               # [G, H]
    out_ref[...] = cell + float(L) * delta


def sr_motion_gate(input_traces, cell_states, hidden_states, params, L=2):
    B, N, T = input_traces.shape
    H = hidden_states.shape[-1]
    M = B * N * N

    # Flat (b, p, l) row batching prepared with cheap XLA broadcasts (a few KB)
    # so the kernel stays rank-2 and needs no grid / in-kernel reshapes.
    rel = (input_traces[:, :, None, :]
           - input_traces[:, None, :, :]).reshape(M, T)                 # [M, T]
    hid_p = jnp.broadcast_to(hidden_states[:, :, None, :],
                             (B, N, N, H)).reshape(M, H)                # [M, H]
    hid_l = jnp.broadcast_to(hidden_states[:, None, :, :],
                             (B, N, N, H)).reshape(M, H)                # [M, H]
    cell2 = cell_states.reshape(B * N, H)                               # [G, H]

    # Fuse g_fc / u_fc once: columns [0:H] = g weights, column [H] = u weights.
    wug = jnp.concatenate([params["wg"], params["wu"]], axis=1)         # [3H, H+1]

    vmem = pl.BlockSpec(memory_space=pltpu.MemorySpace.VMEM)
    out2 = pl.pallas_call(
        functools.partial(_sr_motion_gate_kernel, n_ped=N, L=L),
        out_shape=jax.ShapeDtypeStruct((B * N, H), jnp.float32),
        in_specs=[vmem] * 13,
        out_specs=vmem,
    )(rel, hid_p, hid_l, cell2,
      params["wr1"], params["br1"], params["wr2"], params["br2"],
      params["wr3"], params["br3"], wug, params["bg"], params["wct"])

    return out2.reshape(B, N, H)


def sr_motion_gate_reference(input_traces, cell_states, hidden_states, params, L=2):
    """Literal JAX translation of the PyTorch forward (nested python loops)."""
    B, N, T = input_traces.shape
    Wr1, br1 = params["wr1"], params["br1"]
    Wr2, br2 = params["wr2"], params["br2"]
    Wr3, br3 = params["wr3"], params["br3"]
    Wu = params["wu"]
    Wg, bg = params["wg"], params["bg"]
    WcT = params["wct"]
    hi = jax.lax.Precision.HIGHEST

    def cal_r(traces, target):
        hl_list = []
        for j in range(N):
            rel = target - traces[:, j, :]
            h = jax.nn.relu(jnp.dot(rel, Wr1, precision=hi) + br1)
            h = jax.nn.relu(jnp.dot(h, Wr2, precision=hi) + br2)
            hl_list.append(jnp.dot(h, Wr3, precision=hi) + br3)
        return jnp.stack(hl_list, 1)   # [B, N, H]

    cs = cell_states
    for _ in range(L):
        new_cs = []
        for p in range(N):
            HL = cal_r(input_traces, input_traces[:, p, :])
            u_list, g_list = [], []
            for l in range(N):
                cat = jnp.concatenate(
                    [HL[:, l, :], hidden_states[:, p, :], hidden_states[:, l, :]],
                    axis=1)
                u_list.append(jnp.dot(cat, Wu, precision=hi))                 # [B, 1]
                g_list.append(jax.nn.sigmoid(jnp.dot(cat, Wg, precision=hi) + bg))
            U = jnp.stack(u_list, 2)                           # [B, 1, N]
            eu = jnp.exp(U)
            alpha = eu / jnp.sum(eu, axis=2, keepdims=True)    # [B, 1, N]
            MG = jnp.stack(g_list, 1)                          # [B, N, H]
            mgo = MG * hidden_states
            weighted = jnp.einsum("bij,bjh->bih", alpha, mgo, precision=hi)[:, 0, :]
            delta = jnp.dot(weighted, WcT, precision=hi)
            new_cs.append(delta + cs[:, p, :])
        cs = jnp.stack(new_cs, 1)
    return cs


if __name__ == "__main__":
    B, N, T, H, L = 2, 8, 2, 32, 2   # batch, pedestrians, target_size, hidden_size, L

    key = jax.random.PRNGKey(0)
    ks = jax.random.split(key, 16)

    def uinit(k, shape, fan_in):
        bound = 1.0 / np.sqrt(fan_in)
        return jax.random.uniform(k, shape, jnp.float32, -bound, bound)

    # deterministic synthetic params (stored as [in, out]; biases as [1, out])
    params = {
        "wr1": uinit(ks[0], (T, 32), T),        "br1": uinit(ks[1], (1, 32), T),
        "wr2": uinit(ks[2], (32, 64), 32),      "br2": uinit(ks[3], (1, 64), 32),
        "wr3": uinit(ks[4], (64, H), 64),       "br3": uinit(ks[5], (1, H), 64),
        "wu":  uinit(ks[6], (3 * H, 1), 3 * H),
        "wg":  uinit(ks[7], (3 * H, H), 3 * H), "bg":  uinit(ks[8], (1, H), 3 * H),
        "wct": uinit(ks[9], (H, H), H),
    }

    input_traces = jax.random.normal(ks[10], (B, N, T), jnp.float32)
    cell_states = jax.random.normal(ks[11], (B, N, H), jnp.float32)
    hidden_states = jax.random.normal(ks[12], (B, N, H), jnp.float32) * 0.5

    run = jax.jit(functools.partial(sr_motion_gate, L=L))
    out = jax.block_until_ready(run(input_traces, cell_states, hidden_states, params))

    ref = sr_motion_gate_reference(input_traces, cell_states, hidden_states, params, L=L)
    ref = jax.block_until_ready(ref)

    np.testing.assert_allclose(np.asarray(out), np.asarray(ref), rtol=2e-2, atol=2e-2)
    print("KERNEL_OK")
</pallas_src>

<mosaic_0001>
module attributes {stable_mosaic.version = 11 : i64} {
  func.func @_sr_motion_gate_kernel(%arg0: memref<128x2xf32, #tpu.memory_space<vmem>>, %arg1: memref<128x32xf32, #tpu.memory_space<vmem>>, %arg2: memref<128x32xf32, #tpu.memory_space<vmem>>, %arg3: memref<16x32xf32, #tpu.memory_space<vmem>>, %arg4: memref<2x32xf32, #tpu.memory_space<vmem>>, %arg5: memref<1x32xf32, #tpu.memory_space<vmem>>, %arg6: memref<32x64xf32, #tpu.memory_space<vmem>>, %arg7: memref<1x64xf32, #tpu.memory_space<vmem>>, %arg8: memref<64x32xf32, #tpu.memory_space<vmem>>, %arg9: memref<1x32xf32, #tpu.memory_space<vmem>>, %arg10: memref<96x33xf32, #tpu.memory_space<vmem>>, %arg11: memref<1x32xf32, #tpu.memory_space<vmem>>, %arg12: memref<32x32xf32, #tpu.memory_space<vmem>>, %arg13: memref<16x32xf32, #tpu.memory_space<vmem>>) attributes {dimension_semantics = [], scalar_prefetch = 0 : i64, scratch_operands = 0 : i64, tpu.core_type = #tpu.core_type<tc>} {
    %c0 = arith.constant 0 : index
    %c0_0 = arith.constant 0 : index
    %0 = vector.load %arg0[%c0, %c0_0] : memref<128x2xf32, #tpu.memory_space<vmem>>, vector<128x2xf32>
    %c0_1 = arith.constant 0 : index
    %c0_2 = arith.constant 0 : index
    %1 = vector.load %arg1[%c0_1, %c0_2] : memref<128x32xf32, #tpu.memory_space<vmem>>, vector<128x32xf32>
    %c0_3 = arith.constant 0 : index
    %c0_4 = arith.constant 0 : index
    %2 = vector.load %arg2[%c0_3, %c0_4] : memref<128x32xf32, #tpu.memory_space<vmem>>, vector<128x32xf32>
    %c0_5 = arith.constant 0 : index
    %c0_6 = arith.constant 0 : index
    %3 = vector.load %arg3[%c0_5, %c0_6] : memref<16x32xf32, #tpu.memory_space<vmem>>, vector<16x32xf32>
    %c0_7 = arith.constant 0 : index
    %c0_8 = arith.constant 0 : index
    %4 = vector.load %arg4[%c0_7, %c0_8] : memref<2x32xf32, #tpu.memory_space<vmem>>, vector<2x32xf32>
    %c0_9 = arith.constant 0 : index
    %c0_10 = arith.constant 0 : index
    %5 = vector.load %arg5[%c0_9, %c0_10] : memref<1x32xf32, #tpu.memory_space<vmem>>, vector<1x32xf32>
    %c0_11 = arith.constant 0 : index
    %c0_12 = arith.constant 0 : index
    %6 = vector.load %arg6[%c0_11, %c0_12] : memref<32x64xf32, #tpu.memory_space<vmem>>, vector<32x64xf32>
    %c0_13 = arith.constant 0 : index
    %c0_14 = arith.constant 0 : index
    %7 = vector.load %arg7[%c0_13, %c0_14] : memref<1x64xf32, #tpu.memory_space<vmem>>, vector<1x64xf32>
    %c0_15 = arith.constant 0 : index
    %c0_16 = arith.constant 0 : index
    %8 = vector.load %arg8[%c0_15, %c0_16] : memref<64x32xf32, #tpu.memory_space<vmem>>, vector<64x32xf32>
    %c0_17 = arith.constant 0 : index
    %c0_18 = arith.constant 0 : index
    %9 = vector.load %arg9[%c0_17, %c0_18] : memref<1x32xf32, #tpu.memory_space<vmem>>, vector<1x32xf32>
    %c0_19 = arith.constant 0 : index
    %c0_20 = arith.constant 0 : index
    %10 = vector.load %arg10[%c0_19, %c0_20] : memref<96x33xf32, #tpu.memory_space<vmem>>, vector<96x33xf32>
    %c0_21 = arith.constant 0 : index
    %c0_22 = arith.constant 0 : index
    %11 = vector.load %arg11[%c0_21, %c0_22] : memref<1x32xf32, #tpu.memory_space<vmem>>, vector<1x32xf32>
    %c0_23 = arith.constant 0 : index
    %c0_24 = arith.constant 0 : index
    %12 = vector.load %arg12[%c0_23, %c0_24] : memref<32x32xf32, #tpu.memory_space<vmem>>, vector<32x32xf32>
    %13 = vector.extract_strided_slice %0 {offsets = [0, 0], sizes = [128, 1], strides = [1, 1]} : vector<128x2xf32> to vector<128x1xf32>
    %14 = vector.extract_strided_slice %4 {offsets = [0, 0], sizes = [1, 32], strides = [1, 1]} : vector<2x32xf32> to vector<1x32xf32>
    %15 = vector.broadcast %13 : vector<128x1xf32> to vector<128x32xf32>
    %16 = vector.broadcast %14 : vector<1x32xf32> to vector<128x32xf32>
    %17 = arith.mulf %15, %16 : vector<128x32xf32>
    %18 = vector.extract_strided_slice %0 {offsets = [0, 1], sizes = [128, 1], strides = [1, 1]} : vector<128x2xf32> to vector<128x1xf32>
    %19 = vector.extract_strided_slice %4 {offsets = [1, 0], sizes = [1, 32], strides = [1, 1]} : vector<2x32xf32> to vector<1x32xf32>
    %20 = vector.broadcast %18 : vector<128x1xf32> to vector<128x32xf32>
    %21 = vector.broadcast %19 : vector<1x32xf32> to vector<128x32xf32>
    %22 = arith.mulf %20, %21 : vector<128x32xf32>
    %23 = arith.addf %17, %22 : vector<128x32xf32>
    %24 = vector.broadcast %5 : vector<1x32xf32> to vector<128x32xf32>
    %25 = arith.addf %23, %24 : vector<128x32xf32>
    %cst = arith.constant 0.000000e+00 : f32
    %26 = vector.broadcast %cst : f32 to vector<128x32xf32>
    %27 = arith.maximumf %25, %26 : vector<128x32xf32>
    %cst_25 = arith.constant dense<0.000000e+00> : vector<128x64xf32>
    %28 = tpu.matmul %27, %6, %cst_25 {dimension_numbers = #tpu.dot_dimension_numbers<[1], [0], [0], [1], [0, 0, 1, 1], [], []>} : vector<128x32xf32>, vector<32x64xf32>, vector<128x64xf32> -> vector<128x64xf32>
    %29 = vector.broadcast %7 : vector<1x64xf32> to vector<128x64xf32>
    %30 = arith.addf %28, %29 : vector<128x64xf32>
    %cst_26 = arith.constant 0.000000e+00 : f32
    %31 = vector.broadcast %cst_26 : f32 to vector<128x64xf32>
    %32 = arith.maximumf %30, %31 : vector<128x64xf32>
    %cst_27 = arith.constant dense<0.000000e+00> : vector<128x32xf32>
    %33 = tpu.matmul %32, %8, %cst_27 {dimension_numbers = #tpu.dot_dimension_numbers<[1], [0], [0], [1], [0, 0, 1, 1], [], []>} : vector<128x64xf32>, vector<64x32xf32>, vector<128x32xf32> -> vector<128x32xf32>
    %34 = vector.broadcast %9 : vector<1x32xf32> to vector<128x32xf32>
    %35 = arith.addf %33, %34 : vector<128x32xf32>
    %36 = vector.extract_strided_slice %10 {offsets = [0, 0], sizes = [32, 33], strides = [1, 1]} : vector<96x33xf32> to vector<32x33xf32>
    %cst_28 = arith.constant dense<0.000000e+00> : vector<128x33xf32>
    %37 = tpu.matmul %35, %36, %cst_28 {dimension_numbers = #tpu.dot_dimension_numbers<[1], [0], [0], [1], [0, 0, 1, 1], [], []>} : vector<128x32xf32>, vector<32x33xf32>, vector<128x33xf32> -> vector<128x33xf32>
    %38 = vector.extract_strided_slice %10 {offsets = [32, 0], sizes = [32, 33], strides = [1, 1]} : vector<96x33xf32> to vector<32x33xf32>
    %cst_29 = arith.constant dense<0.000000e+00> : vector<128x33xf32>
    %39 = tpu.matmul %1, %38, %cst_29 {dimension_numbers = #tpu.dot_dimension_numbers<[1], [0], [0], [1], [0, 0, 1, 1], [], []>} : vector<128x32xf32>, vector<32x33xf32>, vector<128x33xf32> -> vector<128x33xf32>
    %40 = arith.addf %37, %39 : vector<128x33xf32>
    %41 = vector.extract_strided_slice %10 {offsets = [64, 0], sizes = [32, 33], strides = [1, 1]} : vector<96x33xf32> to vector<32x33xf32>
    %cst_30 = arith.constant dense<0.000000e+00> : vector<128x33xf32>
    %42 = tpu.matmul %2, %41, %cst_30 {dimension_numbers = #tpu.dot_dimension_numbers<[1], [0], [0], [1], [0, 0, 1, 1], [], []>} : vector<128x32xf32>, vector<32x33xf32>, vector<128x33xf32> -> vector<128x33xf32>
    %43 = arith.addf %40, %42 : vector<128x33xf32>
    %44 = vector.extract_strided_slice %43 {offsets = [0, 0], sizes = [128, 32], strides = [1, 1]} : vector<128x33xf32> to vector<128x32xf32>
    %45 = vector.broadcast %11 : vector<1x32xf32> to vector<128x32xf32>
    %46 = arith.addf %44, %45 : vector<128x32xf32>
    %cst_31 = arith.constant 0.000000e+00 : f32
    %47 = vector.broadcast %cst_31 : f32 to vector<128x32xf32>
    %48 = arith.subf %47, %46 : vector<128x32xf32>
    %49 = math.exp %48 : vector<128x32xf32>
    %cst_32 = arith.constant 1.000000e+00 : f32
    %50 = vector.broadcast %cst_32 : f32 to vector<128x32xf32>
    %51 = arith.addf %50, %49 : vector<128x32xf32>
    %cst_33 = arith.constant 1.000000e+00 : f32
    %52 = vector.broadcast %cst_33 : f32 to vector<128x32xf32>
    %53 = arith.divf %52, %51 : vector<128x32xf32>
    %54 = vector.extract_strided_slice %43 {offsets = [0, 32], sizes = [128, 1], strides = [1, 1]} : vector<128x33xf32> to vector<128x1xf32>
    %55 = math.exp %54 : vector<128x1xf32>
    %56 = tpu.iota {dimensions = array<i32: 1>} : vector<16x128xi32>
    %57 = tpu.iota {dimensions = array<i32: 0>} : vector<16x128xi32>
    %c8_i32 = arith.constant 8 : i32
    %58 = vector.broadcast %c8_i32 : i32 to vector<16x128xi32>
    %59 = arith.muli %57, %58 : vector<16x128xi32>
    %60 = arith.cmpi sge, %56, %59 : vector<16x128xi32>
    %c8_i32_34 = arith.constant 8 : i32
    %61 = vector.broadcast %c8_i32_34 : i32 to vector<16x128xi32>
    %62 = arith.muli %57, %61 : vector<16x128xi32>
    %c8_i32_35 = arith.constant 8 : i32
    %63 = vector.broadcast %c8_i32_35 : i32 to vector<16x128xi32>
    %64 = arith.addi %62, %63 : vector<16x128xi32>
    %65 = arith.cmpi slt, %56, %64 : vector<16x128xi32>
    %66 = arith.andi %60, %65 : vector<16x128xi1>
    %cst_36 = arith.constant 1.000000e+00 : f32
    %cst_37 = arith.constant 0.000000e+00 : f32
    %67 = vector.broadcast %cst_36 : f32 to vector<16x128xf32>
    %68 = vector.broadcast %cst_37 : f32 to vector<16x128xf32>
    %69 = arith.select %66, %67, %68 : vector<16x128xi1>, vector<16x128xf32>
    %70 = arith.mulf %53, %2 : vector<128x32xf32>
    %71 = vector.broadcast %55 : vector<128x1xf32> to vector<128x32xf32>
    %72 = arith.mulf %71, %70 : vector<128x32xf32>
    %cst_38 = arith.constant dense<0.000000e+00> : vector<16x32xf32>
    %73 = tpu.matmul %69, %72, %cst_38 {dimension_numbers = #tpu.dot_dimension_numbers<[1], [0], [0], [1], [0, 0, 1, 1], [], []>} : vector<16x128xf32>, vector<128x32xf32>, vector<16x32xf32> -> vector<16x32xf32>
    %cst_39 = arith.constant dense<0.000000e+00> : vector<16x1xf32>
    %74 = tpu.matmul %69, %55, %cst_39 {dimension_numbers = #tpu.dot_dimension_numbers<[1], [0], [0], [1], [0, 0, 1, 1], [], []>} : vector<16x128xf32>, vector<128x1xf32>, vector<16x1xf32> -> vector<16x1xf32>
    %75 = vector.broadcast %74 : vector<16x1xf32> to vector<16x32xf32>
    %76 = arith.divf %73, %75 : vector<16x32xf32>
    %cst_40 = arith.constant dense<0.000000e+00> : vector<16x32xf32>
    %77 = tpu.matmul %76, %12, %cst_40 {dimension_numbers = #tpu.dot_dimension_numbers<[1], [0], [0], [1], [0, 0, 1, 1], [], []>} : vector<16x32xf32>, vector<32x32xf32>, vector<16x32xf32> -> vector<16x32xf32>
    %cst_41 = arith.constant 2.000000e+00 : f32
    %78 = vector.broadcast %cst_41 : f32 to vector<16x32xf32>
    %79 = arith.mulf %78, %77 : vector<16x32xf32>
    %80 = arith.addf %3, %79 : vector<16x32xf32>
    %c0_42 = arith.constant 0 : index
    %c0_43 = arith.constant 0 : index
    %81 = vector.load %arg13[%c0_42, %c0_43] : memref<16x32xf32, #tpu.memory_space<vmem>>, vector<16x32xf32>
    tpu.vector_store %arg13[%c0_42, %c0_43], %80 {strides = array<i32>} : memref<16x32xf32, #tpu.memory_space<vmem>>, vector<16x32xf32>,
    return
  }
}

</mosaic_0001>

<bundles_post_ra>
// kernel: sr_motion_gate.1
= control target key start
LH: loop header
LB: loop body
LE: loop exit
PB: predicated region body
PF: predicated region fallthrough
CT: control target
= control target key end

     0   :  { %v2793_v2 = vmov 0   ;;  %v2794_v3 = vmov 1   ;;  %s3470_s0 = inlined_call_operand.vmem [shape: f32[128,2], index: 0, kind: input, shape index: {}]   ;;  %s3471_s1 = inlined_call_operand.vmem [shape: f32[128,32], index: 1, kind: input, shape index: {}]   ;;  %s3472_s2 = inlined_call_operand.vmem [shape: f32[128,32], index: 2, kind: input, shape index: {}]   ;;  %s3473_s3 = inlined_call_operand.vmem [shape: f32[16,32], index: 3, kind: input, shape index: {}]   ;;  %s3474_s4 = inlined_call_operand.vmem [shape: f32[2,32], index: 4, kind: input, shape index: {}]   ;;  %s3475_s5 = inlined_call_operand.vmem [shape: f32[1,32], index: 5, kind: input, shape index: {}]   ;;  %s3476_s6 = inlined_call_operand.vmem [shape: f32[32,64], index: 6, kind: input, shape index: {}]   ;;  %s3477_s7 = inlined_call_operand.vmem [shape: f32[1,64], index: 7, kind: input, shape index: {}]   ;;  %s3478_s8 = inlined_call_operand.vmem [shape: f32[64,32], index: 8, kind: input, shape index: {}]   ;;  %s3479_s9 = inlined_call_operand.vmem [shape: f32[1,32], index: 9, kind: input, shape index: {}]   ;;  %s3480_s10 = inlined_call_operand.vmem [shape: f32[96,33], index: 10, kind: input, shape index: {}]   ;;  %s3481_s11 = inlined_call_operand.vmem [shape: f32[1,32], index: 11, kind: input, shape index: {}]   ;;  %s3482_s12 = inlined_call_operand.vmem [shape: f32[32,32], index: 12, kind: input, shape index: {}]   ;;  %s3483_s13 = inlined_call_operand.hbm [shape: f32[16,32], index: 13, kind: output, shape index: {}]  }
   0x1   :  { %v46_v0 = vld [vmem:[%s3470_s0 + $0x8] sm:$0xff]  ;;  %v45_v1 = vld [vmem:[%s3470_s0] sm:$0xff]  ;;  %2622 = vset.pattern.permute.xlu1 %v2793_v2  ;;  %2620 = vset.pattern.permute.xlu0 %v2793_v2 }
   0x2   :  { %135 = vperm.xlu1 %2622, %v46_v0   ;;  %130 = vperm.xlu0 %2620, %v45_v1   ;;  %v97_v4 = vld [vmem:[%s3476_s6] sm:$0xff]  ;;  %v98_v5 = vld [vmem:[%s3476_s6 + $0x8] sm:$0xff] }
   0x6   :  { %2623 = vset.pattern.permute.xlu1 %v2794_v3  ;;  %2621 = vset.pattern.permute.xlu0 %v2794_v3 }
   0x7   :  { %18 = vsyncpa [#allocation3], 0  ;;  %233 = vperm.xlu1 %2623, %v46_v0   ;;  %229 = vperm.xlu0 %2621, %v45_v1   ;;  %v2456_v6 = vpack.c.bf16 %v98_v5, %v97_v4  ;;  %v47_v7 = vld [vmem:[%s3470_s0 + $0x10] sm:$0xff]  ;;  %v100_v9 = vld [vmem:[%s3476_s6 + $0x18] sm:$0xff]  ;;  %v208_v27 = vlaneseq  ;;  %vm372_vm0 = vcmask 261120   ;;  %vm588_vm1 = vcmask 523264  }
   0x8   :  { %v99_v8 = vld [vmem:[%s3476_s6 + $0x10] sm:$0xff]  ;;  %v48_v11 = vld [vmem:[%s3470_s0 + $0x18] sm:$0xff]  ;;  %v49_v12 = vld [vmem:[%s3470_s0 + $0x20] sm:$0xff]  ;;  %s2798_s17 = smov [#allocation2]  }
   0x9   :  { %2457 = vmatprep.subr.bf16.mxu0 %v2456_v6  ;;  %2576 = vmatprep.subr.bf16.mxu1 %v2456_v6  ;;  %v2460_v10 = vpack.c.bf16 %v100_v9, %v99_v8  ;;  %v50_v13 = vld [vmem:[%s3470_s0 + $0x28] sm:$0xff]  ;;  %v51_v14 = vld [vmem:[%s3470_s0 + $0x30] sm:$0xff]  ;;  %v52_v15 = vld [vmem:[%s3470_s0 + $0x38] sm:$0xff]  ;;  %v2944_v28 = vshrl.u32 %v208_v27, 7 }
   0xa   :  { %2459 = vmatpush3.bf16.msra.mxu0 %v2456_v6  ;;  %2578 = vmatpush3.bf16.msra.mxu1 %v2456_v6  ;;  %v53_v16 = vld [vmem:[%s3470_s0 + $0x40] sm:$0xff]  ;;  %v54_v17 = vld [vmem:[%s3470_s0 + $0x48] sm:$0xff]  ;;  %v55_v18 = vld [vmem:[%s3470_s0 + $0x50] sm:$0xff] }
   0xb   :  { %2624 = vset.pattern.permute.xlu1 %v2793_v2  ;;  %237 = vperm.xlu0 %2621, %v47_v7   ;;  %v56_v19 = vld [vmem:[%s3470_s0 + $0x58] sm:$0xff]  ;;  %v57_v20 = vld [vmem:[%s3470_s0 + $0x60] sm:$0xff]  ;;  %v58_v21 = vld [vmem:[%s3470_s0 + $0x68] sm:$0xff]  ;;  %v210_v29 = vsub.s32 0, %v2944_v28  ;;  %v294_v30 = vsub.s32 1, %v2944_v28 }
   0xc   :  { %140 = vperm.xlu1 %2624, %v47_v7   ;;  %2461 = vmatprep.subr.bf16.mxu0 %v2460_v10  ;;  %v59_v22 = vld [vmem:[%s3470_s0 + $0x70] sm:$0xff]  ;;  %v60_v23 = vld [vmem:[%s3470_s0 + $0x78] sm:$0xff]  ;;  %v102_v24 = vld [vmem:[%s3478_s8] sm:$0xff] }
   0xd   :  { %2577 = vmatprep.subr.bf16.mxu1 %v2460_v10  ;;  %v103_v25 = vld [vmem:[%s3478_s8 + $0x8] sm:$0xff]  ;;  %v95_v31 = vld [vmem:[%s3474_s4] sm:$0x3] }
   0xe   :  { %2463 = vmatpush3.bf16.msra.mxu0 %v2460_v10  ;;  %2579 = vmatpush3.bf16.msra.mxu1 %v2460_v10  ;;  %v2940_v26 = vpack.c.bf16 %v103_v25, %v102_v24  ;;  %v2951_v34 = vrot.slane %v95_v31, %v210_v29  ;;  %v2953_v35 = vrot.slane %v95_v31, %v294_v30  ;;  %v2962_v42 = vld [vmem:[%s3475_s5] ss:$0 sm:$0xff]  ;;  %v107_v29 = vld [vmem:[%s3478_s8 + $0x28] sm:$0xff] }
   0xf   :  { %241 = vperm.xlu0 %2621, %v48_v11   ;;  %v106_v25 = vld [vmem:[%s3478_s8 + $0x20] sm:$0xff] }
  0x10   :  { %145 = vperm.xlu1 %2624, %v48_v11   ;;  %2465 = vmatprep.subr.bf16.mxu1 %v2940_v26 }
  0x13   :  { %245 = vperm.xlu0 %2621, %v49_v12  }
  0x14   :  { %150 = vperm.xlu1 %2624, %v49_v12  }
  0x17   :  { %249 = vperm.xlu0 %2621, %v50_v13  }
  0x18   :  { %155 = vperm.xlu1 %2624, %v50_v13  }
  0x1b   :  { %253 = vperm.xlu0 %2621, %v51_v14  }
  0x1c   :  { %160 = vperm.xlu1 %2624, %v51_v14  }
  0x1f   :  { %257 = vperm.xlu0 %2621, %v52_v15  }
  0x20   :  { %165 = vperm.xlu1 %2624, %v52_v15   ;;  %v104_v15 = vld [vmem:[%s3478_s8 + $0x10] sm:$0xff] }
  0x23   :  { %261 = vperm.xlu0 %2621, %v53_v16  }
  0x24   :  { %170 = vperm.xlu1 %2624, %v53_v16   ;;  %v105_v16 = vld [vmem:[%s3478_s8 + $0x18] sm:$0xff] }
  0x27   :  { %265 = vperm.xlu0 %2621, %v54_v17  }
  0x28   :  { %175 = vperm.xlu1 %2624, %v54_v17  }
  0x2b   :  { %269 = vperm.xlu0 %2621, %v55_v18  }
  0x2c   :  { %180 = vperm.xlu1 %2624, %v55_v18  }
  0x2f   :  { %273 = vperm.xlu0 %2621, %v56_v19  }
  0x30   :  { %185 = vperm.xlu1 %2624, %v56_v19  }
  0x33   :  { %277 = vperm.xlu0 %2621, %v57_v20  }
  0x34   :  { %190 = vperm.xlu1 %2624, %v57_v20  }
  0x37   :  { %281 = vperm.xlu0 %2621, %v58_v21  }
  0x38   :  { %195 = vperm.xlu1 %2624, %v58_v21  }
  0x3b   :  { %285 = vperm.xlu0 %2621, %v59_v22  }
  0x3c   :  { %200 = vperm.xlu1 %2624, %v59_v22   ;;  %v2468_v22 = vpack.c.bf16 %v105_v16, %v104_v15 }
  0x3f   :  { %289 = vperm.xlu0 %2621, %v60_v23  }
  0x40   :  { %205 = vperm.xlu1 %2624, %v60_v23  }
  0x81   :  { %v136_v32 = vpop.permute.xlu1 %135  ;;  %v131_v33 = vpop.permute.xlu0 %130 }
  0x82   :  { %v213_v38 = vmul.f32 %v2951_v34, %v136_v32  ;;  %v212_v39 = vmul.f32 %v2951_v34, %v131_v33 }
  0x86   :  { %v234_v36 = vpop.permute.xlu1 %233  ;;  %v230_v37 = vpop.permute.xlu0 %229 }
  0x87   :  { %v297_v40 = vmul.f32 %v2953_v35, %v234_v36  ;;  %v296_v41 = vmul.f32 %v2953_v35, %v230_v37  ;;  %v2472_v37 = vpack.c.bf16 %v107_v29, %v106_v25 }
  0x89   :  { %v313_v43 = vadd.f32 %v297_v40, %v213_v38  ;;  %v312_v44 = vadd.f32 %v296_v41, %v212_v39 }
  0x8a   :  { %v238_v45 = vpop.permute.xlu0 %237 }
  0x8b   :  { %v335_v46 = vadd.f32 %v2962_v42, %v313_v43  ;;  %v298_v47 = vmul.f32 %v2953_v35, %v238_v45  ;;  %v141_v48 = vpop.permute.xlu1 %140  ;;  %v334_v49 = vadd.f32 %v2962_v42, %v312_v44 }
  0x8c   :  { %v214_v50 = vmul.f32 %v2951_v34, %v141_v48 }
  0x8d   :  { %v351_v51 = vmax.f32 %v335_v46, 0.0  ;;  %v350_v52 = vmax.f32 %v334_v49, 0.0 }
  0x8e   :  { %v314_v53 = vadd.f32 %v298_v47, %v214_v50  ;;  %v242_v54 = vpop.permute.xlu0 %241 }
  0x8f   :  { %v299_v55 = vmul.f32 %v2953_v35, %v242_v54  ;;  %v146_v56 = vpop.permute.xlu1 %145  ;;  %2215 = vmatprep.mubr.msk.f32.mxu0 %vm372_vm0, %v350_v52 }
  0x90   :  { %v336_v57 = vadd.f32 %v2962_v42, %v314_v53  ;;  %v215_v58 = vmul.f32 %v2951_v34, %v146_v56  ;;  %2216 = vmatmul.mubr.msk.f32.vlgmr.msra.gmra.mrb[0].mxu0 %vm372_vm0, %v351_v51 }
  0x92   :  { %v352_v59 = vmax.f32 %v336_v57, 0.0  ;;  %v315_v60 = vadd.f32 %v299_v55, %v215_v58  ;;  %v246_v61 = vpop.permute.xlu0 %245 }
  0x93   :  { %v300_v62 = vmul.f32 %v2953_v35, %v246_v61  ;;  %v151_v63 = vpop.permute.xlu1 %150 }
  0x94   :  { %v337_v0 = vadd.f32 %v2962_v42, %v315_v60  ;;  %v216_v1 = vmul.f32 %v2951_v34, %v151_v63  ;;  %2218 = vmatprep.mubr.msk.f32.mxu0 %vm372_vm0, %v352_v59 }
  0x96   :  { %v353_v3 = vmax.f32 %v337_v0, 0.0  ;;  %v316_v4 = vadd.f32 %v300_v62, %v216_v1  ;;  %v250_v5 = vpop.permute.xlu0 %249 }
  0x97   :  { %v301_v6 = vmul.f32 %v2953_v35, %v250_v5  ;;  %v156_v7 = vpop.permute.xlu1 %155 }
  0x98   :  { %v217_v8 = vmul.f32 %v2951_v34, %v156_v7  ;;  %2219 = vmatmul.mubr.msk.f32.gmra.mrb[2].mxu0 %vm372_vm0, %v353_v3  ;;  %v338_v9 = vadd.f32 %v2962_v42, %v316_v4 }
  0x9a   :  { %v317_v10 = vadd.f32 %v301_v6, %v217_v8  ;;  %v254_v11 = vpop.permute.xlu0 %253  ;;  %v354_v12 = vmax.f32 %v338_v9, 0.0 }
  0x9b   :  { %v302_v13 = vmul.f32 %v2953_v35, %v254_v11  ;;  %v161_v14 = vpop.permute.xlu1 %160 }
  0x9c   :  { %v339_v17 = vadd.f32 %v2962_v42, %v317_v10  ;;  %v218_v18 = vmul.f32 %v2951_v34, %v161_v14  ;;  %2221 = vmatprep.mubr.msk.f32.mxu1 %vm372_vm0, %v354_v12 }
  0x9e   :  { %v355_v19 = vmax.f32 %v339_v17, 0.0  ;;  %v318_v20 = vadd.f32 %v302_v13, %v218_v18  ;;  %v258_v21 = vpop.permute.xlu0 %257 }
  0x9f   :  { %v303_v23 = vmul.f32 %v2953_v35, %v258_v21  ;;  %v166_v24 = vpop.permute.xlu1 %165 }
  0xa0   :  { %v340_v30 = vadd.f32 %v2962_v42, %v318_v20  ;;  %v219_v31 = vmul.f32 %v2951_v34, %v166_v24  ;;  %2222 = vmatmul.mubr.msk.f32.vlgmr.msra.gmra.mrb[0].mxu1 %vm372_vm0, %v355_v19 }
  0xa1   :  { %2467 = vmatpush3.bf16.msra.mxu1 %v2940_v26 }
  0xa2   :  { %v356_v32 = vmax.f32 %v340_v30, 0.0  ;;  %v319_v33 = vadd.f32 %v303_v23, %v219_v31  ;;  %v262_v36 = vpop.permute.xlu0 %261  ;;  %2469 = vmatprep.subr.bf16.mxu1 %v2468_v22 }
  0xa3   :  { %v304_v38 = vmul.f32 %v2953_v35, %v262_v36  ;;  %v171_v39 = vpop.permute.xlu1 %170 }
  0xa4   :  { %v341_v40 = vadd.f32 %v2962_v42, %v319_v33  ;;  %v220_v41 = vmul.f32 %v2951_v34, %v171_v39  ;;  %2224 = vmatprep.mubr.msk.f32.mxu1 %vm372_vm0, %v356_v32  ;;  %v117_v39 = vld [vmem:[%s3480_s10 + $0x30] sm:$0xff] }
  0xa5   :  { %2471 = vmatpush3.bf16.msra.mxu1 %v2468_v22 }
  0xa6   :  { %v357_v43 = vmax.f32 %v341_v40, 0.0  ;;  %v320_v44 = vadd.f32 %v304_v38, %v220_v41  ;;  %v266_v45 = vpop.permute.xlu0 %265  ;;  %2473 = vmatprep.subr.bf16.mxu1 %v2472_v37  ;;  %v116_v38 = vld [vmem:[%s3480_s10 + $0x28] sm:$0xff]  ;;  %v118_v41 = vld [vmem:[%s3480_s10 + $0x38] sm:$0xff] }
  0xa7   :  { %v305_v26 = vmul.f32 %v2953_v35, %v266_v45  ;;  %v176_v46 = vpop.permute.xlu1 %175  ;;  %v111_v45 = vld [vmem:[%s3480_s10] sm:$0xff] }
  0xa8   :  { %v342_v47 = vadd.f32 %v2962_v42, %v320_v44  ;;  %v221_v48 = vmul.f32 %v2951_v34, %v176_v46  ;;  %2225 = vmatmul.mubr.msk.f32.gmra.mrb[2].mxu1 %vm372_vm0, %v357_v43  ;;  %v61_v43 = vld [vmem:[%s3471_s1] sm:$0xff]  ;;  %v2484_v44 = vpack.c.bf16 %v118_v41, %v117_v39 }
  0xa9   :  { %2475 = vmatpush3.bf16.msra.mxu1 %v2472_v37  ;;  %v109_v37 = vld [vmem:[%s3478_s8 + $0x38] sm:$0xff]  ;;  %2287 = vmatprep.mubr.msk.f32.mxu0 %vm372_vm0, %v61_v43 }
  0xaa   :  { %v358_v49 = vmax.f32 %v342_v47, 0.0  ;;  %v321_v50 = vadd.f32 %v305_v26, %v221_v48  ;;  %v270_v51 = vpop.permute.xlu0 %269  ;;  %v112_v26 = vld [vmem:[%s3480_s10 + $0x8] sm:$0xff]  ;;  %v63_v48 = vld [vmem:[%s3471_s1 + $0x10] sm:$0xff] }
  0xab   :  { %v306_v52 = vmul.f32 %v2953_v35, %v270_v51  ;;  %v181_v53 = vpop.permute.xlu1 %180  ;;  %v2488_v46 = vpack.c.bf16 %v112_v26, %v111_v45  ;;  %v62_v47 = vld [vmem:[%s3471_s1 + $0x8] sm:$0xff] }
  0xac   :  { %v343_v54 = vadd.f32 %v2962_v42, %v321_v50  ;;  %v222_v55 = vmul.f32 %v2951_v34, %v181_v53  ;;  %2227 = vmatprep.mubr.msk.f32.mxu1 %vm372_vm0, %v358_v49  ;;  %v64_v49 = vld [vmem:[%s3471_s1 + $0x18] sm:$0xff]  ;;  %v65_v50 = vld [vmem:[%s3471_s1 + $0x20] sm:$0xff]  ;;  %v66_v51 = vld [vmem:[%s3471_s1 + $0x28] sm:$0xff] }
  0xad   :  { %v68_v53 = vld [vmem:[%s3471_s1 + $0x38] sm:$0xff] }
  0xae   :  { %v359_v56 = vmax.f32 %v343_v54, 0.0  ;;  %v322_v57 = vadd.f32 %v306_v52, %v222_v55  ;;  %v274_v58 = vpop.permute.xlu0 %273  ;;  %v67_v52 = vld [vmem:[%s3471_s1 + $0x30] sm:$0xff]  ;;  %v69_v54 = vld [vmem:[%s3471_s1 + $0x40] sm:$0xff]  ;;  %v70_v55 = vld [vmem:[%s3471_s1 + $0x48] sm:$0xff] }
  0xaf   :  { %v307_v59 = vmul.f32 %v2953_v35, %v274_v58  ;;  %v186_v60 = vpop.permute.xlu1 %185  ;;  %v73_v58 = vld [vmem:[%s3471_s1 + $0x60] sm:$0xff] }
  0xb0   :  { %v344_v61 = vadd.f32 %v2962_v42, %v322_v57  ;;  %v223_v62 = vmul.f32 %v2951_v34, %v186_v60  ;;  %2228 = vmatmul.mubr.msk.f32.gmra.mrb[4].mxu1 %vm372_vm0, %v359_v56  ;;  %v71_v56 = vld [vmem:[%s3471_s1 + $0x50] sm:$0xff]  ;;  %v72_v57 = vld [vmem:[%s3471_s1 + $0x58] sm:$0xff]  ;;  %v1972_v60 = vld [vmem:[%s3477_s7] ss:$0 sm:$0xff] }
  0xb2   :  { %v360_v63 = vmax.f32 %v344_v61, 0.0  ;;  %v323_v0 = vadd.f32 %v307_v59, %v223_v62  ;;  %v278_v1 = vpop.permute.xlu0 %277  ;;  %v74_v59 = vld [vmem:[%s3471_s1 + $0x68] sm:$0xff] }
  0xb3   :  { %v308_v3 = vmul.f32 %v2953_v35, %v278_v1  ;;  %v191_v4 = vpop.permute.xlu1 %190 }
  0xb4   :  { %v345_v5 = vadd.f32 %v2962_v42, %v323_v0  ;;  %v224_v6 = vmul.f32 %v2951_v34, %v191_v4  ;;  %2230 = vmatprep.mubr.msk.f32.mxu1 %vm372_vm0, %v360_v63 }
  0xb6   :  { %v361_v7 = vmax.f32 %v345_v5, 0.0  ;;  %v324_v8 = vadd.f32 %v308_v3, %v224_v6  ;;  %v282_v9 = vpop.permute.xlu0 %281 }
  0xb7   :  { %v309_v10 = vmul.f32 %v2953_v35, %v282_v9  ;;  %v196_v11 = vpop.permute.xlu1 %195 }
  0xb8   :  { %v346_v12 = vadd.f32 %v2962_v42, %v324_v8  ;;  %v225_v13 = vmul.f32 %v2951_v34, %v196_v11  ;;  %2231 = vmatmul.mubr.msk.f32.gmra.mrb[6].mxu1 %vm372_vm0, %v361_v7 }
  0xba   :  { %v362_v14 = vmax.f32 %v346_v12, 0.0  ;;  %v325_v15 = vadd.f32 %v309_v10, %v225_v13  ;;  %v286_v16 = vpop.permute.xlu0 %285 }
  0xbb   :  { %v310_v17 = vmul.f32 %v2953_v35, %v286_v16  ;;  %v201_v18 = vpop.permute.xlu1 %200 }
  0xbc   :  { %v347_v19 = vadd.f32 %v2962_v42, %v325_v15  ;;  %v226_v20 = vmul.f32 %v2951_v34, %v201_v18  ;;  %2233 = vmatprep.mubr.msk.f32.mxu1 %vm372_vm0, %v362_v14 }
  0xbe   :  { %v363_v21 = vmax.f32 %v347_v19, 0.0  ;;  %v326_v22 = vadd.f32 %v310_v17, %v226_v20  ;;  %v290_v23 = vpop.permute.xlu0 %289 }
  0xbf   :  { %v311_v24 = vmul.f32 %v2953_v35, %v290_v23  ;;  %v206_v25 = vpop.permute.xlu1 %205  ;;  %v108_v35 = vld [vmem:[%s3478_s8 + $0x30] sm:$0xff]  ;;  %s1960_s8 = sshll.u32 %s2798_s17, 4  ;;  %s1961_s8 = int_to_ptr.vmem [resolvable:$true] %s1960_s8 }
  0xc0   :  { %v348_v29 = vadd.f32 %v2962_v42, %v326_v22  ;;  %v227_v30 = vmul.f32 %v2951_v34, %v206_v25  ;;  %2234 = vmatmul.mubr.msk.f32.gmra.mrb[8].mxu1 %vm372_vm0, %v363_v21  ;;  %v2476_v34 = vpack.c.bf16 %v109_v37, %v108_v35  ;;  %s2769_s18 = scalar_lea.vmem %s1961_s8, 256  ;;  %p2774_p1 = scmp.lt.s32.totalorder %s1961_s8, %s1961_s8 }
  0xc1   :  { %p2770_p0 = scmp.ne.s32.totalorder %s1961_s8, %s2769_s18  ;;  %p2775_p2 = scmp.lt.s32.totalorder %s2769_s18, %s2769_s18 }
  0xc2   :  { %v364_v31 = vmax.f32 %v348_v29, 0.0  ;;  %v327_v32 = vadd.f32 %v311_v24, %v227_v30  ;;  %2477 = vmatprep.subr.bf16.mxu1 %v2476_v34 }
  0xc3   :  { %2479 = vmatpush3.bf16.msra.mxu1 %v2476_v34  ;;  %p2776_p3 = por %p2775_p2, %p2774_p1 }
  0xc4   :  { %v349_v33 = vadd.f32 %v2962_v42, %v327_v32  ;;  %2236 = vmatprep.mubr.msk.f32.mxu1 %vm372_vm0, %v364_v31  ;;  %v115_v42 = vld [vmem:[%s3480_s10 + $0x20] sm:$0xff] }
  0xc5   :  { %v2480_v40 = vpack.c.bf16 %v116_v38, %v115_v42  ;;  %p2777_p4 = pnand %p2776_p3, %p2770_p0 }
  0xc6   :  { %v365_v36 = vmax.f32 %v349_v33, 0.0 }
  0xc7   :  { %2481 = vmatprep.subr.bf16.mxu0 %v2480_v40 }
  0xc8   :  { %2237 = vmatmul.mubr.msk.f32.gmra.mrb[10].mxu1 %vm372_vm0, %v365_v36  ;;  %2483 = vmatpush3.bf16.msra.mxu0 %v2480_v40 }
  0xc9   :  { %2485 = vmatprep.subr.bf16.mxu0 %v2484_v44 }
  0xcc   :  { %2487 = vmatpush3.bf16.msra.mxu0 %v2484_v44 }
  0xcd   :  { %2489 = vmatprep.subr.bf16.mxu0 %v2488_v46 }
  0xcf   :  { %2288 = vmatmul.mubr.msk.f32.vlgmr.msra.gmra.mrb[4].mxu0 %vm372_vm0, %v62_v47 }
  0xd0   :  { %2290 = vmatprep.mubr.msk.f32.mxu0 %vm372_vm0, %v63_v48  ;;  %2491 = vmatpush3.bf16.msra.mxu0 %v2488_v46  ;;  %v113_v48 = vld [vmem:[%s3480_s10 + $0x10] sm:$0xff] }
  0xd3   :  { %2291 = vmatmul.mubr.msk.f32.gmra.mrb[6].mxu0 %vm372_vm0, %v64_v49  ;;  %v114_v49 = vld [vmem:[%s3480_s10 + $0x18] sm:$0xff] }
  0xd4   :  { %2293 = vmatprep.mubr.msk.f32.mxu0 %vm372_vm0, %v65_v50  ;;  %v75_v50 = vld [vmem:[%s3471_s1 + $0x70] sm:$0xff] }
  0xd7   :  { %2294 = vmatmul.mubr.msk.f32.gmra.mrb[8].mxu0 %vm372_vm0, %v66_v51  ;;  %v2492_v51 = vpack.c.bf16 %v114_v49, %v113_v48 }
  0xd8   :  { %2296 = vmatprep.mubr.msk.f32.mxu0 %vm372_vm0, %v67_v52  ;;  %v76_v52 = vld [vmem:[%s3471_s1 + $0x78] sm:$0xff] }
  0xd9   :  { %2493 = vmatprep.subr.bf16.mxu0 %v2492_v51 }
  0xda   :  { %2495 = vmatpush3.bf16.msra.mxu0 %v2492_v51 }
  0xdb   :  { %2297 = vmatmul.mubr.msk.f32.gmra.mrb[10].mxu0 %vm372_vm0, %v68_v53  ;;  %v119_v53 = vld [vmem:[%s3480_s10 + $0x40] sm:$0xff] }
  0xdc   :  { %2299 = vmatprep.mubr.msk.f32.mxu0 %vm372_vm0, %v69_v54  ;;  %v120_v54 = vld [vmem:[%s3480_s10 + $0x48] sm:$0xff] }
  0xdf   :  { %2300 = vmatmul.mubr.msk.f32.gmra.mrb[12].mxu0 %vm372_vm0, %v70_v55  ;;  %v2496_v55 = vpack.c.bf16 %v120_v54, %v119_v53 }
  0xe0   :  { %2302 = vmatprep.mubr.msk.f32.mxu0 %vm372_vm0, %v71_v56  ;;  %v1989_v56 = vld [vmem:[%s3479_s9] ss:$0 sm:$0xff] }
  0xe1   :  { %2497 = vmatprep.subr.bf16.mxu0 %v2496_v55 }
  0xe3   :  { %2303 = vmatmul.mubr.msk.f32.gmra.mrb[14].mxu0 %vm372_vm0, %v72_v57 }
  0xe4   :  { %2305 = vmatprep.mubr.msk.f32.mxu0 %vm372_vm0, %v73_v58  ;;  %v121_v58 = vld [vmem:[%s3480_s10 + $0x50] sm:$0xff] }
  0xe7   :  { %2306 = vmatmul.mubr.msk.f32.gmra.mrb[16].mxu0 %vm372_vm0, %v74_v59  ;;  %v122_v59 = vld [vmem:[%s3480_s10 + $0x58] sm:$0xff] }
  0xe8   :  { %2308 = vmatprep.mubr.msk.f32.mxu0 %vm372_vm0, %v75_v50 }
  0xeb   :  { %2309 = vmatmul.mubr.msk.f32.gmra.mrb[18].mxu0 %vm372_vm0, %v76_v52 }
 0x163   :  { %v2217_v61 = vpop.f32.mrb[0].mxu0 }
 0x164   :  { %v493_v62 = vadd.f32 %v2217_v61, %v1972_v60  ;;  %v487_v63 = vpop.f32.mrb[1].mxu0 }
 0x165   :  { %v488_v0 = vadd.f32 %v1972_v60, %v487_v63  ;;  %v2500_v63 = vpack.c.bf16 %v122_v59, %v121_v58 }
 0x166   :  { %v567_v3 = vmax.f32 %v493_v62, 0.0 }
 0x167   :  { %v566_v1 = vmax.f32 %v488_v0, 0.0 }
 0x169   :  { %2255 = vmatprep.mubr.msk.f32.mxu1 %vm588_vm1, %v566_v1 }
 0x16a   :  { %2256 = vmatmul.mubr.msk.f32.vlgmr.msra.gmra.mrb[12].mxu1 %vm588_vm1, %v567_v3 }
 0x16b   :  { %v2220_v4 = vpop.f32.mrb[2].mxu0 }
 0x16c   :  { %v503_v5 = vadd.f32 %v2220_v4, %v1972_v60  ;;  %v497_v6 = vpop.f32.mrb[3].mxu0 }
 0x16d   :  { %v498_v7 = vadd.f32 %v1972_v60, %v497_v6 }
 0x16e   :  { %v569_v9 = vmax.f32 %v503_v5, 0.0 }
 0x16f   :  { %v568_v8 = vmax.f32 %v498_v7, 0.0 }
 0x171   :  { %2258 = vmatprep.mubr.msk.f32.mxu1 %vm588_vm1, %v568_v8 }
 0x172   :  { %2259 = vmatmul.mubr.msk.f32.gmra.mrb[14].mxu1 %vm588_vm1, %v569_v9 }
 0x173   :  { %v2223_v10 = vpop.f32.mrb[0].mxu1 }
 0x174   :  { %v513_v11 = vadd.f32 %v2223_v10, %v1972_v60  ;;  %v507_v12 = vpop.f32.mrb[1].mxu1 }
 0x175   :  { %v508_v13 = vadd.f32 %v1972_v60, %v507_v12 }
 0x176   :  { %v571_v15 = vmax.f32 %v513_v11, 0.0 }
 0x177   :  { %v570_v14 = vmax.f32 %v508_v13, 0.0 }
 0x179   :  { %2261 = vmatprep.mubr.msk.f32.mxu1 %vm588_vm1, %v570_v14 }
 0x17a   :  { %2262 = vmatmul.mubr.msk.f32.gmra.mrb[16].mxu1 %vm588_vm1, %v571_v15 }
 0x17b   :  { %v2226_v16 = vpop.f32.mrb[2].mxu1 }
 0x17c   :  { %v523_v17 = vadd.f32 %v2226_v16, %v1972_v60  ;;  %v517_v18 = vpop.f32.mrb[3].mxu1 }
 0x17d   :  { %v518_v19 = vadd.f32 %v1972_v60, %v517_v18 }
 0x17e   :  { %v573_v21 = vmax.f32 %v523_v17, 0.0 }
 0x17f   :  { %v572_v20 = vmax.f32 %v518_v19, 0.0 }
 0x181   :  { %2264 = vmatprep.mubr.msk.f32.mxu1 %vm588_vm1, %v572_v20 }
 0x182   :  { %2265 = vmatmul.mubr.msk.f32.gmra.mrb[18].mxu1 %vm588_vm1, %v573_v21 }
 0x183   :  { %v2229_v22 = vpop.f32.mrb[4].mxu1 }
 0x184   :  { %v533_v23 = vadd.f32 %v2229_v22, %v1972_v60  ;;  %v527_v24 = vpop.f32.mrb[5].mxu1 }
 0x185   :  { %v528_v25 = vadd.f32 %v1972_v60, %v527_v24 }
 0x186   :  { %v575_v30 = vmax.f32 %v533_v23, 0.0 }
 0x187   :  { %v574_v29 = vmax.f32 %v528_v25, 0.0 }
 0x189   :  { %2267 = vmatprep.mubr.msk.f32.mxu1 %vm588_vm1, %v574_v29 }
 0x18a   :  { %2268 = vmatmul.mubr.msk.f32.gmra.mrb[20].mxu1 %vm588_vm1, %v575_v30 }
 0x18b   :  { %v2232_v31 = vpop.f32.mrb[6].mxu1 }
 0x18c   :  { %v543_v32 = vadd.f32 %v2232_v31, %v1972_v60  ;;  %v537_v33 = vpop.f32.mrb[7].mxu1 }
 0x18d   :  { %v538_v36 = vadd.f32 %v1972_v60, %v537_v33  ;;  %v3191_v33 = vld [vmem:[%s3472_s2 + $0x8] sm:$0xff] }
 0x18e   :  { %v577_v37 = vmax.f32 %v543_v32, 0.0  ;;  %v3182_v32 = vld [vmem:[%s3472_s2] sm:$0xff] }
 0x18f   :  { %v576_v35 = vmax.f32 %v538_v36, 0.0  ;;  %v3196_v36 = vld [vmem:[%s3472_s2 + $0x10] sm:$0xff] }
 0x191   :  { %2270 = vmatprep.mubr.msk.f32.mxu1 %vm588_vm1, %v576_v35  ;;  %v3205_v35 = vld [vmem:[%s3472_s2 + $0x18] sm:$0xff] }
 0x192   :  { %2271 = vmatmul.mubr.msk.f32.gmra.mrb[22].mxu1 %vm588_vm1, %v577_v37  ;;  %v3210_v37 = vld [vmem:[%s3472_s2 + $0x20] sm:$0xff] }
 0x193   :  { %v2235_v34 = vpop.f32.mrb[8].mxu1 }
 0x194   :  { %v553_v42 = vadd.f32 %v2235_v34, %v1972_v60  ;;  %v547_v38 = vpop.f32.mrb[9].mxu1  ;;  %v3219_v34 = vld [vmem:[%s3472_s2 + $0x28] sm:$0xff] }
 0x195   :  { %v548_v39 = vadd.f32 %v1972_v60, %v547_v38  ;;  %v3233_v38 = vld [vmem:[%s3472_s2 + $0x38] sm:$0xff] }
 0x196   :  { %v579_v41 = vmax.f32 %v553_v42, 0.0  ;;  %v3224_v42 = vld [vmem:[%s3472_s2 + $0x30] sm:$0xff] }
 0x197   :  { %v578_v40 = vmax.f32 %v548_v39, 0.0  ;;  %v3238_v39 = vld [vmem:[%s3472_s2 + $0x40] sm:$0xff] }
 0x199   :  { %2273 = vmatprep.mubr.msk.f32.mxu1 %vm588_vm1, %v578_v40  ;;  %v3247_v40 = vld [vmem:[%s3472_s2 + $0x48] sm:$0xff] }
 0x19a   :  { %2274 = vmatmul.mubr.msk.f32.gmra.mrb[24].mxu1 %vm588_vm1, %v579_v41  ;;  %v3252_v41 = vld [vmem:[%s3472_s2 + $0x50] sm:$0xff] }
 0x19b   :  { %v2238_v43 = vpop.f32.mrb[10].mxu1 }
 0x19c   :  { %v563_v44 = vadd.f32 %v2238_v43, %v1972_v60  ;;  %v557_v45 = vpop.f32.mrb[11].mxu1  ;;  %v3261_v43 = vld [vmem:[%s3472_s2 + $0x58] sm:$0xff] }
 0x19d   :  { %v558_v26 = vadd.f32 %v1972_v60, %v557_v45  ;;  %v3275_v45 = vld [vmem:[%s3472_s2 + $0x68] sm:$0xff] }
 0x19e   :  { %v581_v47 = vmax.f32 %v563_v44, 0.0  ;;  %v3266_v44 = vld [vmem:[%s3472_s2 + $0x60] sm:$0xff] }
 0x19f   :  { %v580_v46 = vmax.f32 %v558_v26, 0.0  ;;  %v3280_v26 = vld [vmem:[%s3472_s2 + $0x70] sm:$0xff] }
 0x1a1   :  { %2276 = vmatprep.mubr.msk.f32.mxu1 %vm588_vm1, %v580_v46  ;;  %v3289_v46 = vld [vmem:[%s3472_s2 + $0x78] sm:$0xff]  ;;  %s2796_s2 = smov 96  }
 0x1a2   :  { %2277 = vmatmul.mubr.msk.f32.gmra.mrb[26].mxu1 %vm588_vm1, %v581_v47  ;;  %v2795_v47 = vmov 32  }
 0x1a3   :  { %2625 = vset.pattern.permute.xlu0 %v2795_v47  ;;  %2626 = vset.pattern.permute.xlu1 %v2795_v47 }
 0x23d   :  { %v2257_v57 = vpop.f32.mrb[12].mxu1 }
 0x23e   :  { %v703_v60 = vpop.f32.mrb[13].mxu1  ;;  %v709_v62 = vadd.f32 %v2257_v57, %v1989_v56 }
 0x23f   :  { %v704_v61 = vadd.f32 %v1989_v56, %v703_v60 }
 0x241   :  { %2319 = vmatprep.mubr.msk.f32.mxu0 %vm372_vm0, %v704_v61 }
 0x242   :  { %2320 = vmatmul.mubr.msk.f32.vlgmr.msra.gmra.mrb[4].mxu0 %vm372_vm0, %v709_v62 }
 0x243   :  { %2499 = vmatpush3.bf16.msra.mxu0 %v2496_v55 }
 0x244   :  { %2501 = vmatprep.subr.bf16.mxu0 %v2500_v63 }
 0x245   :  { %v2260_v0 = vpop.f32.mrb[14].mxu1 }
 0x246   :  { %v713_v1 = vpop.f32.mrb[15].mxu1  ;;  %v719_v4 = vadd.f32 %v2260_v0, %v1989_v56 }
 0x247   :  { %v714_v3 = vadd.f32 %v1989_v56, %v713_v1  ;;  %2503 = vmatpush3.bf16.msra.mxu0 %v2500_v63 }
 0x249   :  { %2322 = vmatprep.mubr.msk.f32.mxu0 %vm372_vm0, %v714_v3 }
 0x24a   :  { %2323 = vmatmul.mubr.msk.f32.gmra.mrb[6].mxu0 %vm372_vm0, %v719_v4 }
 0x24d   :  { %v2263_v5 = vpop.f32.mrb[16].mxu1 }
 0x24e   :  { %v723_v6 = vpop.f32.mrb[17].mxu1  ;;  %v729_v8 = vadd.f32 %v2263_v5, %v1989_v56 }
 0x24f   :  { %v724_v7 = vadd.f32 %v1989_v56, %v723_v6 }
 0x251   :  { %2325 = vmatprep.mubr.msk.f32.mxu0 %vm372_vm0, %v724_v7 }
 0x252   :  { %2326 = vmatmul.mubr.msk.f32.gmra.mrb[8].mxu0 %vm372_vm0, %v729_v8 }
 0x255   :  { %v2266_v9 = vpop.f32.mrb[18].mxu1 }
 0x256   :  { %v733_v10 = vpop.f32.mrb[19].mxu1  ;;  %v739_v12 = vadd.f32 %v2266_v9, %v1989_v56 }
 0x257   :  { %v734_v11 = vadd.f32 %v1989_v56, %v733_v10 }
 0x259   :  { %2328 = vmatprep.mubr.msk.f32.mxu0 %vm372_vm0, %v734_v11 }
 0x25a   :  { %2329 = vmatmul.mubr.msk.f32.gmra.mrb[10].mxu0 %vm372_vm0, %v739_v12 }
 0x25d   :  { %v2269_v13 = vpop.f32.mrb[20].mxu1 }
 0x25e   :  { %v743_v14 = vpop.f32.mrb[21].mxu1  ;;  %v749_v16 = vadd.f32 %v2269_v13, %v1989_v56 }
 0x25f   :  { %v744_v15 = vadd.f32 %v1989_v56, %v743_v14 }
 0x261   :  { %2331 = vmatprep.mubr.msk.f32.mxu0 %vm372_vm0, %v744_v15 }
 0x262   :  { %2332 = vmatmul.mubr.msk.f32.gmra.mrb[12].mxu0 %vm372_vm0, %v749_v16 }
 0x265   :  { %v2272_v17 = vpop.f32.mrb[22].mxu1 }
 0x266   :  { %v753_v18 = vpop.f32.mrb[23].mxu1  ;;  %v759_v20 = vadd.f32 %v2272_v17, %v1989_v56 }
 0x267   :  { %v754_v19 = vadd.f32 %v1989_v56, %v753_v18 }
 0x269   :  { %2334 = vmatprep.mubr.msk.f32.mxu0 %vm372_vm0, %v754_v19 }
 0x26a   :  { %2335 = vmatmul.mubr.msk.f32.gmra.mrb[14].mxu0 %vm372_vm0, %v759_v20 }
 0x26d   :  { %v2275_v21 = vpop.f32.mrb[24].mxu1 }
 0x26e   :  { %v763_v22 = vpop.f32.mrb[25].mxu1  ;;  %v769_v24 = vadd.f32 %v2275_v21, %v1989_v56 }
 0x26f   :  { %v764_v23 = vadd.f32 %v1989_v56, %v763_v22 }
 0x271   :  { %2337 = vmatprep.mubr.msk.f32.mxu0 %vm372_vm0, %v764_v23 }
 0x272   :  { %2338 = vmatmul.mubr.msk.f32.gmra.mrb[16].mxu0 %vm372_vm0, %v769_v24 }
 0x275   :  { %v2278_v25 = vpop.f32.mrb[26].mxu1 }
 0x276   :  { %v773_v29 = vpop.f32.mrb[27].mxu1  ;;  %v779_v31 = vadd.f32 %v2278_v25, %v1989_v56 }
 0x277   :  { %v774_v30 = vadd.f32 %v1989_v56, %v773_v29 }
 0x279   :  { %2340 = vmatprep.mubr.msk.f32.mxu0 %vm372_vm0, %v774_v30 }
 0x27a   :  { %2341 = vmatmul.mubr.msk.f32.gmra.mrb[18].mxu0 %vm372_vm0, %v779_v31 }
 0x27b   :  { %2351 = vmatprep.mubr.msk.f32.mxu0 %vm372_vm0, %v3182_v32 }
 0x27e   :  { %2352 = vmatmul.mubr.msk.f32.vlgmr.msra.gmra.mrb[4].mxu0 %vm372_vm0, %v3191_v33 }
 0x27f   :  { %2354 = vmatprep.mubr.msk.f32.mxu0 %vm372_vm0, %v3196_v36 }
 0x282   :  { %2355 = vmatmul.mubr.msk.f32.gmra.mrb[6].mxu0 %vm372_vm0, %v3205_v35 }
 0x283   :  { %2357 = vmatprep.mubr.msk.f32.mxu0 %vm372_vm0, %v3210_v37 }
 0x286   :  { %2358 = vmatmul.mubr.msk.f32.gmra.mrb[8].mxu0 %vm372_vm0, %v3219_v34 }
 0x287   :  { %2360 = vmatprep.mubr.msk.f32.mxu0 %vm372_vm0, %v3224_v42 }
 0x28a   :  { %2361 = vmatmul.mubr.msk.f32.gmra.mrb[10].mxu0 %vm372_vm0, %v3233_v38 }
 0x28b   :  { %2363 = vmatprep.mubr.msk.f32.mxu0 %vm372_vm0, %v3238_v39 }
 0x28e   :  { %2364 = vmatmul.mubr.msk.f32.gmra.mrb[12].mxu0 %vm372_vm0, %v3247_v40 }
 0x28f   :  { %2366 = vmatprep.mubr.msk.f32.mxu0 %vm372_vm0, %v3252_v41 }
 0x292   :  { %2367 = vmatmul.mubr.msk.f32.gmra.mrb[14].mxu0 %vm372_vm0, %v3261_v43 }
 0x293   :  { %2369 = vmatprep.mubr.msk.f32.mxu0 %vm372_vm0, %v3266_v44 }
 0x296   :  { %2370 = vmatmul.mubr.msk.f32.gmra.mrb[16].mxu0 %vm372_vm0, %v3275_v45 }
 0x297   :  { %2372 = vmatprep.mubr.msk.f32.mxu0 %vm372_vm0, %v3280_v26 }
 0x29a   :  { %2373 = vmatmul.mubr.msk.f32.gmra.mrb[18].mxu0 %vm372_vm0, %v3289_v46 }
 0x351   :  { %v3293_v48 = vpop.f32.mrb[4].mxu0 }
 0x352   :  { %v1497_v49 = vmul.f32 1.442695, %v3293_v48  ;;  %v3296_v50 = vpop.f32.mrb[5].mxu0 }
 0x353   :  { %v1495_v51 = vmul.f32 1.442695, %v3296_v50 }
 0x354   :  { %2669 = vpow2.f32 %v1497_v49 }
 0x355   :  { %2671 = vpow2.f32 %v1495_v51  ;;  %v3299_v52 = vpop.f32.mrb[6].mxu0 }
 0x356   :  { %v1501_v53 = vmul.f32 1.442695, %v3299_v52  ;;  %v3302_v54 = vpop.f32.mrb[7].mxu0 }
 0x357   :  { %v1499_v55 = vmul.f32 1.442695, %v3302_v54 }
 0x358   :  { %2673 = vpow2.f32 %v1501_v53 }
 0x359   :  { %v3305_v56 = vpop.f32.mrb[8].mxu0  ;;  %2675 = vpow2.f32 %v1499_v55 }
 0x35a   :  { %v3307_v57 = vpop.f32.mrb[9].mxu0  ;;  %v1505_v59 = vmul.f32 1.442695, %v3305_v56 }
 0x35b   :  { %v1503_v58 = vmul.f32 1.442695, %v3307_v57 }
 0x35d   :  { %v3311_v60 = vpop.f32.mrb[10].mxu0  ;;  %2677 = vpow2.f32 %v1503_v58 }
 0x35e   :  { %v3313_v61 = vpop.eup %2669  ;;  %v1509_v62 = vmul.f32 1.442695, %v3311_v60  ;;  %v3316_v63 = vpop.f32.mrb[11].mxu0  ;;  %2679 = vpow2.f32 %v1505_v59 }
 0x35f   :  { %v3318_v0 = vpop.eup %2671  ;;  %v1507_v1 = vmul.f32 1.442695, %v3316_v63  ;;  %1567 = vperm.xlu0 %2625, %v3313_v61  }
 0x360   :  { %1562 = vperm.xlu1 %2626, %v3318_v0   ;;  %v2627_v3 = vpack.i.bf16 %v3313_v61, %v3318_v0  ;;  %2681 = vpow2.f32 %v1509_v62  ;;  %v2797_v61 = vmov 1.0  }
 0x361   :  { %v3325_v4 = vpop.f32.mrb[12].mxu0  ;;  %2683 = vpow2.f32 %v1507_v1 }
 0x362   :  { %v3327_v5 = vpop.f32.mrb[13].mxu0  ;;  %v2674_v6 = vpop.eup %2673  ;;  %v1513_v10 = vmul.f32 1.442695, %v3325_v4 }
 0x363   :  { %v2676_v8 = vpop.eup %2675  ;;  %v1511_v16 = vmul.f32 1.442695, %v3327_v5 }
 0x364   :  { %1577 = vperm.xlu1 %2626, %v2674_v6   ;;  %v2632_v13 = vpack.i.bf16 %v2674_v6, %v2676_v8  ;;  %2685 = vpow2.f32 %v1513_v10 }
 0x365   :  { %v3329_v7 = vpop.f32.mrb[14].mxu0  ;;  %2687 = vpow2.f32 %v1511_v16 }
 0x366   :  { %v3331_v9 = vpop.f32.mrb[15].mxu0  ;;  %v1517_v21 = vmul.f32 1.442695, %v3329_v7 }
 0x367   :  { %v2678_v11 = vpop.eup %2677  ;;  %v1515_v24 = vmul.f32 1.442695, %v3331_v9 }
 0x368   :  { %1572 = vperm.xlu1 %2626, %v2676_v8   ;;  %v2680_v14 = vpop.eup %2679  ;;  %1582 = vperm.xlu0 %2625, %v2678_v11   ;;  %2689 = vpow2.f32 %v1517_v21 }
 0x369   :  { %v3334_v12 = vpop.f32.mrb[16].mxu0  ;;  %v2637_v20 = vpack.i.bf16 %v2680_v14, %v2678_v11  ;;  %2691 = vpow2.f32 %v1515_v24  ;;  %v1532_v11 = vmul.u32 8, %v2944_v28 }
 0x36a   :  { %v3336_v15 = vpop.f32.mrb[17].mxu0  ;;  %v2682_v17 = vpop.eup %2681  ;;  %v1521_v25 = vmul.f32 1.442695, %v3334_v12 }
 0x36b   :  { %v2684_v18 = vpop.eup %2683  ;;  %v1519_v30 = vmul.f32 1.442695, %v3336_v15  ;;  %v1536_v16 = vadd.s32 8, %v1532_v11 }
 0x36c   :  { %1587 = vperm.xlu1 %2626, %v2680_v14   ;;  %1592 = vperm.xlu0 %2625, %v2684_v18   ;;  %v2642_v23 = vpack.i.bf16 %v2682_v17, %v2684_v18  ;;  %2693 = vpow2.f32 %v1521_v25  ;;  %v3356_v14 = vand.u32 127, %v208_v27 }
 0x36d   :  { %v3339_v19 = vpop.f32.mrb[18].mxu0  ;;  %2695 = vpow2.f32 %v1519_v30 }
 0x36e   :  { %v3342_v22 = vpop.f32.mrb[19].mxu0  ;;  %v2686_v29 = vpop.eup %2685  ;;  %v1525_v47 = vmul.f32 1.442695, %v3339_v19  ;;  %vm1534_vm2 = vcmp.ge.s32.totalorder %v3356_v14, %v1532_v11  ;;  %vm1538_vm3 = vcmp.lt.s32.totalorder %v3356_v14, %v1536_v16 }
 0x36f   :  { %v2688_v31 = vpop.eup %2687  ;;  %v1523_v53 = vmul.f32 1.442695, %v3342_v22  ;;  %vm3360_vm4 = vmand %vm1534_vm2, %vm1538_vm3 }
 0x370   :  { %1597 = vperm.xlu1 %2626, %v2682_v17   ;;  %1602 = vperm.xlu0 %2625, %v2688_v31   ;;  %v2647_v49 = vpack.i.bf16 %v2686_v29, %v2688_v31  ;;  %2697 = vpow2.f32 %v1525_v47 }
 0x371   :  { %2699 = vpow2.f32 %v1523_v53  ;;  %2407 = vmatprep.mubr.msk.f32.mxu1 %vm3360_vm4, %v2797_v61 }
 0x372   :  { %v2690_v51 = vpop.eup %2689 }
 0x373   :  { %v2692_v55 = vpop.eup %2691 }
 0x374   :  { %1607 = vperm.xlu1 %2626, %v2686_v29   ;;  %1612 = vperm.xlu0 %2625, %v2692_v55   ;;  %v2652_v58 = vpack.i.bf16 %v2690_v51, %v2692_v55 }
 0x376   :  { %v2694_v59 = vpop.eup %2693 }
 0x377   :  { %v2696_v62 = vpop.eup %2695 }
 0x378   :  { %1617 = vperm.xlu1 %2626, %v2690_v51   ;;  %1622 = vperm.xlu0 %2625, %v2696_v62   ;;  %v2657_v1 = vpack.i.bf16 %v2694_v59, %v2696_v62 }
 0x37a   :  { %v2698_v6 = vpop.eup %2697 }
 0x37b   :  { %v2700_v8 = vpop.eup %2699 }
 0x37c   :  { %1627 = vperm.xlu1 %2626, %v2694_v59   ;;  %1632 = vperm.xlu0 %2625, %v2700_v8   ;;  %v2662_v10 = vpack.i.bf16 %v2698_v6, %v2700_v8 }
 0x380   :  { %1637 = vperm.xlu1 %2626, %v2698_v6   ;;  %2628 = vrot.lane.b32.xlu0 %v2627_v3, %s2796_s2 }
 0x381   :  { %2667 = vset.pattern.permute.xlu0 %v2793_v2 }
 0x384   :  { %2633 = vrot.lane.b32.xlu1 %v2632_v13, %s2796_s2  ;;  %2638 = vrot.lane.b32.xlu0 %v2637_v20, %s2796_s2 }
 0x385   :  { %2668 = vset.pattern.permute.xlu1 %v2793_v2  ;;  %v3370_v2 = vld [vmem:[%s3481_s11] ss:$0 sm:$0xff] }
 0x386   :  { %v1384_v27 = vadd.f32 %v3293_v48, %v3370_v2  ;;  %v1383_v0 = vadd.f32 %v3370_v2, %v3296_v50  ;;  %v1386_v21 = vadd.f32 %v3299_v52, %v3370_v2  ;;  %v1388_v48 = vadd.f32 %v3305_v56, %v3370_v2 }
 0x387   :  { %v1387_v50 = vadd.f32 %v3370_v2, %v3307_v57  ;;  %v1390_v29 = vadd.f32 %v3311_v60, %v3370_v2  ;;  %v1392_v60 = vadd.f32 %v3325_v4, %v3370_v2 }
 0x388   :  { %2643 = vrot.lane.b32.xlu1 %v2642_v23, %s2796_s2  ;;  %2648 = vrot.lane.b32.xlu0 %v2647_v49, %s2796_s2  ;;  %v1400_v3 = vsub.f32 0.0, %v1384_v27  ;;  %v1399_v17 = vsub.f32 0.0, %v1383_v0  ;;  %v1385_v23 = vadd.f32 %v3370_v2, %v3302_v54  ;;  %v1402_v24 = vsub.f32 0.0, %v1386_v21 }
 0x389   :  { %v1404_v47 = vsub.f32 0.0, %v1388_v48  ;;  %v1403_v52 = vsub.f32 0.0, %v1387_v50  ;;  %v1389_v54 = vadd.f32 %v3370_v2, %v3316_v63  ;;  %v1406_v49 = vsub.f32 0.0, %v1390_v29 }
 0x38a   :  { %v1417_v18 = vmul.f32 1.442695, %v1400_v3  ;;  %v1415_v20 = vmul.f32 1.442695, %v1399_v17  ;;  %v1401_v25 = vsub.f32 0.0, %v1385_v23  ;;  %v1391_v63 = vadd.f32 %v3370_v2, %v3327_v5 }
 0x38b   :  { %v1421_v30 = vmul.f32 1.442695, %v1402_v24  ;;  %v1425_v53 = vmul.f32 1.442695, %v1404_v47  ;;  %v1423_v56 = vmul.f32 1.442695, %v1403_v52  ;;  %v1394_v27 = vadd.f32 %v3329_v7, %v3370_v2 }
 0x38c   :  { %2653 = vrot.lane.b32.xlu1 %v2652_v58, %s2796_s2  ;;  %2658 = vrot.lane.b32.xlu0 %v2657_v1, %s2796_s2  ;;  %2701 = vpow2.f32 %v1417_v18  ;;  %v1419_v31 = vmul.f32 1.442695, %v1401_v25  ;;  %v1405_v58 = vsub.f32 0.0, %v1389_v54  ;;  %v1429_v59 = vmul.f32 1.442695, %v1406_v49 }
 0x38d   :  { %2703 = vpow2.f32 %v1415_v20  ;;  %v1408_v6 = vsub.f32 0.0, %v1392_v60  ;;  %v1407_v11 = vsub.f32 0.0, %v1391_v63  ;;  %v1393_v3 = vadd.f32 %v3370_v2, %v3331_v9 }
 0x38e   :  { %2705 = vpow2.f32 %v1421_v30  ;;  %v1427_v1 = vmul.f32 1.442695, %v1405_v58  ;;  %v1410_v5 = vsub.f32 0.0, %v1394_v27  ;;  %v1396_v23 = vadd.f32 %v3334_v12, %v3370_v2 }
 0x38f   :  { %2707 = vpow2.f32 %v1419_v31  ;;  %v1433_v16 = vmul.f32 1.442695, %v1408_v6  ;;  %v1431_v18 = vmul.f32 1.442695, %v1407_v11  ;;  %v1409_v48 = vsub.f32 0.0, %v1393_v3 }
 0x390   :  { %2663 = vrot.lane.b32.xlu1 %v2662_v10, %s2796_s2  ;;  %2709 = vpow2.f32 %v1425_v53  ;;  %v1395_v7 = vadd.f32 %v3370_v2, %v3336_v15  ;;  %v1437_v30 = vmul.f32 1.442695, %v1410_v5  ;;  %v1412_v47 = vsub.f32 0.0, %v1396_v23 }
 0x391   :  { %2711 = vpow2.f32 %v1423_v56  ;;  %v1435_v52 = vmul.f32 1.442695, %v1409_v48 }
 0x392   :  { %2713 = vpow2.f32 %v1429_v59  ;;  %v1411_v54 = vsub.f32 0.0, %v1395_v7  ;;  %v1441_v58 = vmul.f32 1.442695, %v1412_v47  ;;  %v1397_v59 = vadd.f32 %v3370_v2, %v3342_v22 }
 0x396   :  { %v2702_v51 = vpop.eup %2701 }
 0x397   :  { %v2704_v55 = vpop.eup %2703  ;;  %v1448_v57 = vadd.f32 1.0, %v2702_v51  ;;  %v1398_v51 = vadd.f32 %v3339_v19, %v3370_v2 }
 0x398   :  { %v1447_v62 = vadd.f32 1.0, %v2704_v55  ;;  %v2706_v8 = vpop.eup %2705 }
 0x399   :  { %2715 = vrcp.f32 %v1448_v57  ;;  %v2708_v10 = vpop.eup %2707  ;;  %v1450_v4 = vadd.f32 1.0, %v2706_v8 }
 0x39a   :  { %2717 = vrcp.f32 %v1447_v62  ;;  %v1449_v0 = vadd.f32 1.0, %v2708_v10  ;;  %v2710_v17 = vpop.eup %2709  ;;  %v1439_v62 = vmul.f32 1.442695, %v1411_v54 }
 0x39b   :  { %2719 = vpow2.f32 %v1427_v1  ;;  %v2712_v20 = vpop.eup %2711  ;;  %v1452_v25 = vadd.f32 1.0, %v2710_v17  ;;  %v1414_v1 = vsub.f32 0.0, %v1398_v51 }
 0x39c   :  { %2721 = vpow2.f32 %v1433_v16  ;;  %v2714_v21 = vpop.eup %2713  ;;  %v1451_v29 = vadd.f32 1.0, %v2712_v20 }
 0x39d   :  { %2723 = vrcp.f32 %v1450_v4  ;;  %v1454_v31 = vadd.f32 1.0, %v2714_v21  ;;  %v1445_v11 = vmul.f32 1.442695, %v1414_v1 }
 0x39e   :  { %2725 = vrcp.f32 %v1449_v0 }
 0x39f   :  { %2727 = vpow2.f32 %v1431_v18 }
 0x3a0   :  { %2729 = vrcp.f32 %v1452_v25 }
 0x3a1   :  { %2731 = vrcp.f32 %v1451_v29 }
 0x3a2   :  { %2733 = vpow2.f32 %v1437_v30 }
 0x3a3   :  { %v2716_v24 = vpop.eup %2715  ;;  %2735 = vrcp.f32 %v1454_v31 }
 0x3a4   :  { %v2718_v50 = vpop.eup %2717  ;;  %v1545_v49 = vmul.f32 %v2716_v24, %v3191_v33  ;;  %2737 = vpow2.f32 %v1435_v52 }
 0x3a5   :  { %v2720_v9 = vpop.eup %2719  ;;  %v1544_v15 = vmul.f32 %v2718_v50, %v3182_v32  ;;  %v1413_v32 = vsub.f32 0.0, %v1397_v59 }
 0x3a6   :  { %v1453_v12 = vadd.f32 1.0, %v2720_v9  ;;  %v2722_v60 = vpop.eup %2721 }
 0x3a7   :  { %v2724_v33 = vpop.eup %2723  ;;  %v1456_v10 = vadd.f32 1.0, %v2722_v60  ;;  %v1443_v0 = vmul.f32 1.442695, %v1413_v32 }
 0x3a8   :  { %2739 = vrcp.f32 %v1453_v12  ;;  %v2726_v19 = vpop.eup %2725  ;;  %v1547_v2 = vmul.f32 %v2724_v33, %v3205_v35 }
 0x3a9   :  { %v2728_v6 = vpop.eup %2727  ;;  %2741 = vpow2.f32 %v1441_v58  ;;  %v1546_v27 = vmul.f32 %v2726_v19, %v3196_v36 }
 0x3aa   :  { %2743 = vpow2.f32 %v1439_v62  ;;  %v2730_v16 = vpop.eup %2729  ;;  %v1455_v22 = vadd.f32 1.0, %v2728_v6 }
 0x3ab   :  { %v2732_v4 = vpop.eup %2731  ;;  %2745 = vrcp.f32 %v1456_v10  ;;  %v1549_v48 = vmul.f32 %v2730_v16, %v3219_v34 }
 0x3ac   :  { %v2734_v17 = vpop.eup %2733  ;;  %2747 = vpow2.f32 %v1445_v11  ;;  %v1548_v25 = vmul.f32 %v2732_v4, %v3210_v37 }
 0x3ad   :  { %v2736_v21 = vpop.eup %2735  ;;  %2749 = vrcp.f32 %v1455_v22  ;;  %v1458_v7 = vadd.f32 1.0, %v2734_v17 }
 0x3ae   :  { %v2738_v23 = vpop.eup %2737  ;;  %2751 = vpow2.f32 %v1443_v0  ;;  %v1551_v54 = vmul.f32 %v2736_v21, %v3233_v38  ;;  %v1531_v0 = vadd.s32 8, %v2944_v28 }
 0x3af   :  { %v1457_v30 = vadd.f32 1.0, %v2738_v23  ;;  %2753 = vrcp.f32 %v1458_v7 }
 0x3b1   :  { %2755 = vrcp.f32 %v1457_v30 }
 0x3b2   :  { %v2740_v35 = vpop.eup %2739 }
 0x3b3   :  { %v2742_v9 = vpop.eup %2741  ;;  %v1550_v52 = vmul.f32 %v2740_v35, %v3224_v42 }
 0x3b4   :  { %v1460_v34 = vadd.f32 1.0, %v2742_v9 }
 0x3b6   :  { %2757 = vrcp.f32 %v1460_v34 }
 0x3de   :  { %v1568_v53 = vpop.permute.xlu0 %1567 }
 0x3df   :  { %v1641_v55 = vmul.f32 %v1568_v53, %v1545_v49  ;;  %v1563_v56 = vpop.permute.xlu1 %1562  ;;  %v2744_v49 = vpop.eup %2743 }
 0x3e0   :  { %v1640_v57 = vmul.f32 %v1563_v56, %v1544_v15  ;;  %v2746_v53 = vpop.eup %2745  ;;  %v1459_v15 = vadd.f32 1.0, %v2744_v49 }
 0x3e1   :  { %v2748_v56 = vpop.eup %2747  ;;  %v1553_v38 = vmul.f32 %v2746_v53, %v3247_v40 }
 0x3e2   :  { %v2504_v63 = vpack.c.bf16 %v1641_v55, %v1640_v57  ;;  %v2750_v58 = vpop.eup %2749  ;;  %2759 = vrcp.f32 %v1459_v15  ;;  %v1462_v57 = vadd.f32 1.0, %v2748_v56 }
 0x3e3   :  { %v1578_v8 = vpop.permute.xlu1 %1577  ;;  %v2752_v42 = vpop.eup %2751  ;;  %v1552_v60 = vmul.f32 %v2750_v58, %v3238_v39 }
 0x3e4   :  { %2505 = vmatprep.subr.bf16.mxu1 %v2504_v63  ;;  %v1643_v18 = vmul.f32 %v1578_v8, %v1547_v2  ;;  %v1461_v62 = vadd.f32 1.0, %v2752_v42  ;;  %2761 = vrcp.f32 %v1462_v57 }
 0x3e5   :  { %2507 = vmatpush3.bf16.msra.mxu1 %v2504_v63  ;;  %v2754_v63 = vpop.eup %2753 }
 0x3e6   :  { %v2756_v6 = vpop.eup %2755  ;;  %2763 = vrcp.f32 %v1461_v62  ;;  %v1555_v10 = vmul.f32 %v2754_v63, %v3261_v43 }
 0x3e7   :  { %v1573_v3 = vpop.permute.xlu1 %1572  ;;  %v1583_v5 = vpop.permute.xlu0 %1582  ;;  %v1554_v40 = vmul.f32 %v2756_v6, %v3252_v41  ;;  %v1533_v41 = vmul.u32 8, %v1531_v0 }
 0x3e8   :  { %v1642_v20 = vmul.f32 %v1573_v3, %v1546_v27  ;;  %v1644_v50 = vmul.f32 %v1583_v5, %v1548_v25  ;;  %v2758_v11 = vpop.eup %2757 }
 0x3e9   :  { %v1557_v4 = vmul.f32 %v2758_v11, %v3275_v45  ;;  %v1537_v28 = vadd.s32 8, %v1533_v41  ;;  %vm1535_vm5 = vcmp.ge.s32.totalorder %v3356_v14, %v1533_v41  ;;  %v124_v11 = vld [vmem:[%s3482_s12] sm:$0xff] }
 0x3ea   :  { %v2508_v24 = vpack.c.bf16 %v1643_v18, %v1642_v20 }
 0x3eb   :  { %v1588_v36 = vpop.permute.xlu1 %1587  ;;  %v1593_v31 = vpop.permute.xlu0 %1592  ;;  %vm1539_vm6 = vcmp.lt.s32.totalorder %v3356_v14, %v1537_v28 }
 0x3ec   :  { %v1645_v29 = vmul.f32 %v1588_v36, %v1549_v48  ;;  %2509 = vmatprep.subr.bf16.mxu1 %v2508_v24  ;;  %v1646_v12 = vmul.f32 %v1593_v31, %v1550_v52  ;;  %v2760_v39 = vpop.eup %2759  ;;  %vm3423_vm7 = vmand %vm1535_vm5, %vm1539_vm6 }
 0x3ed   :  { %2511 = vmatpush3.bf16.msra.mxu1 %v2508_v24  ;;  %v1556_v17 = vmul.f32 %v2760_v39, %v3266_v44 }
 0x3ee   :  { %v2512_v47 = vpack.c.bf16 %v1645_v29, %v1644_v50  ;;  %v2762_v20 = vpop.eup %2761 }
 0x3ef   :  { %v1598_v37 = vpop.permute.xlu1 %1597  ;;  %v1603_v1 = vpop.permute.xlu0 %1602  ;;  %v1559_v25 = vmul.f32 %v2762_v20, %v3289_v46 }
 0x3f0   :  { %v1647_v51 = vmul.f32 %v1598_v37, %v1551_v54  ;;  %2513 = vmatprep.subr.bf16.mxu1 %v2512_v47  ;;  %v1648_v19 = vmul.f32 %v1603_v1, %v1552_v60  ;;  %v2764_v21 = vpop.eup %2763 }
 0x3f1   :  { %2515 = vmatpush3.bf16.msra.mxu1 %v2512_v47  ;;  %v1558_v48 = vmul.f32 %v2764_v21, %v3280_v26 }
 0x3f2   :  { %v2516_v55 = vpack.c.bf16 %v1647_v51, %v1646_v12 }
 0x3f3   :  { %v1608_v59 = vpop.permute.xlu1 %1607  ;;  %v1613_v22 = vpop.permute.xlu0 %1612 }
 0x3f4   :  { %2517 = vmatprep.subr.bf16.mxu1 %v2516_v55  ;;  %v1649_v33 = vmul.f32 %v1608_v59, %v1553_v38  ;;  %v1650_v2 = vmul.f32 %v1613_v22, %v1554_v40  ;;  %v125_v40 = vld [vmem:[%s3482_s12 + $0x8] sm:$0xff]  ;;  %v127_v22 = vld [vmem:[%s3482_s12 + $0x18] sm:$0xff] }
 0x3f5   :  { %2519 = vmatpush3.bf16.msra.mxu1 %v2516_v55 }
 0x3f6   :  { %v2520_v32 = vpack.c.bf16 %v1649_v33, %v1648_v19 }
 0x3f7   :  { %v1618_v8 = vpop.permute.xlu1 %1617  ;;  %v1623_v43 = vpop.permute.xlu0 %1622 }
 0x3f8   :  { %2521 = vmatprep.subr.bf16.mxu1 %v2520_v32  ;;  %v1651_v16 = vmul.f32 %v1618_v8, %v1555_v10  ;;  %v1652_v5 = vmul.f32 %v1623_v43, %v1556_v17 }
 0x3f9   :  { %2523 = vmatpush3.bf16.msra.mxu1 %v2520_v32 }
 0x3fa   :  { %v2524_v3 = vpack.c.bf16 %v1651_v16, %v1650_v2  ;;  %v2568_v16 = vpack.c.bf16 %v125_v40, %v124_v11 }
 0x3fb   :  { %v1628_v27 = vpop.permute.xlu1 %1627  ;;  %v1633_v35 = vpop.permute.xlu0 %1632 }
 0x3fc   :  { %v1653_v18 = vmul.f32 %v1628_v27, %v1557_v4  ;;  %2525 = vmatprep.subr.bf16.mxu1 %v2524_v3  ;;  %v1654_v44 = vmul.f32 %v1633_v35, %v1558_v48 }
 0x3fd   :  { %2527 = vmatpush3.bf16.msra.mxu1 %v2524_v3 }
 0x3fe   :  { %v2528_v23 = vpack.c.bf16 %v1653_v18, %v1652_v5  ;;  %v94_v18 = vld [vmem:[%s3473_s3 + $0x8] sm:$0xff]  ;;  %v93_v5 = vld [vmem:[%s3473_s3] sm:$0xff] }
 0x3ff   :  { %v1638_v24 = vpop.permute.xlu1 %1637  ;;  %v2629_v50 = vpop.permute.xlu0 %2628 }
 0x400   :  { %v1655_v45 = vmul.f32 %v1638_v24, %v1559_v25  ;;  %2529 = vmatprep.subr.bf16.mxu1 %v2528_v23  ;;  %v2631_v29 = vunpack.i.h.bf16 %v2629_v50  ;;  %v2630_v9 = vunpack.i.l.bf16 %v2629_v50 }
 0x401   :  { %2531 = vmatpush3.bf16.msra.mxu1 %v2528_v23 }
 0x402   :  { %v2532_v36 = vpack.c.bf16 %v1655_v45, %v1654_v44  ;;  %v2536_v46 = vpack.c.bf16 %v2631_v29, %v2630_v9 }
 0x403   :  { %v2634_v7 = vpop.permute.xlu1 %2633  ;;  %v2639_v47 = vpop.permute.xlu0 %2638 }
 0x404   :  { %v2636_v30 = vunpack.i.h.bf16 %v2634_v7  ;;  %v2635_v31 = vunpack.i.l.bf16 %v2634_v7  ;;  %2533 = vmatprep.subr.bf16.mxu1 %v2532_v36  ;;  %v2641_v54 = vunpack.i.h.bf16 %v2639_v47  ;;  %v2640_v49 = vunpack.i.l.bf16 %v2639_v47 }
 0x405   :  { %2535 = vmatpush3.bf16.msra.mxu1 %v2532_v36 }
 0x406   :  { %v2540_v52 = vpack.c.bf16 %v2636_v30, %v2635_v31  ;;  %2537 = vmatprep.subr.bf16.mxu1 %v2536_v46  ;;  %v2544_v37 = vpack.c.bf16 %v2641_v54, %v2640_v49 }
 0x407   :  { %v2644_v14 = vpop.permute.xlu1 %2643  ;;  %v2649_v51 = vpop.permute.xlu0 %2648 }
 0x408   :  { %2408 = vmatmul.mubr.msk.f32.vlgmr.msra.gmra.mrb[28].mxu1 %vm3423_vm7, %v2797_v61  ;;  %v2646_v34 = vunpack.i.h.bf16 %v2644_v14  ;;  %v2645_v12 = vunpack.i.l.bf16 %v2644_v14  ;;  %v2651_v15 = vunpack.i.h.bf16 %v2649_v51  ;;  %v2650_v55 = vunpack.i.l.bf16 %v2649_v51 }
 0x409   :  { %2539 = vmatpush3.bf16.msra.mxu1 %v2536_v46  ;;  %2442 = vmatprep.mubr.msk.f32.mxu1 %vm3360_vm4, %v2797_v61 }
 0x40a   :  { %2541 = vmatprep.subr.bf16.mxu1 %v2540_v52  ;;  %v2548_v53 = vpack.c.bf16 %v2646_v34, %v2645_v12  ;;  %v2552_v58 = vpack.c.bf16 %v2651_v15, %v2650_v55 }
 0x40b   :  { %v2654_v56 = vpop.permute.xlu1 %2653  ;;  %v2659_v38 = vpop.permute.xlu0 %2658 }
 0x40c   :  { %v2656_v59 = vunpack.i.h.bf16 %v2654_v56  ;;  %v2655_v42 = vunpack.i.l.bf16 %v2654_v56  ;;  %v2661_v57 = vunpack.i.h.bf16 %v2659_v38  ;;  %v2660_v60 = vunpack.i.l.bf16 %v2659_v38 }
 0x40d   :  { %2543 = vmatpush3.bf16.msra.mxu1 %v2540_v52 }
 0x40e   :  { %2545 = vmatprep.subr.bf16.mxu1 %v2544_v37  ;;  %v2556_v13 = vpack.c.bf16 %v2656_v59, %v2655_v42  ;;  %v2560_v62 = vpack.c.bf16 %v2661_v57, %v2660_v60 }
 0x40f   :  { %v2664_v33 = vpop.permute.xlu1 %2663 }
 0x410   :  { %v2666_v1 = vunpack.i.h.bf16 %v2664_v33  ;;  %v2665_v63 = vunpack.i.l.bf16 %v2664_v33 }
 0x411   :  { %2547 = vmatpush3.bf16.msra.mxu1 %v2544_v37 }
 0x412   :  { %2549 = vmatprep.subr.bf16.mxu1 %v2548_v53  ;;  %v2564_v19 = vpack.c.bf16 %v2666_v1, %v2665_v63 }
 0x415   :  { %2551 = vmatpush3.bf16.msra.mxu1 %v2548_v53 }
 0x416   :  { %2553 = vmatprep.subr.bf16.mxu1 %v2552_v58 }
 0x419   :  { %2555 = vmatpush3.bf16.msra.mxu1 %v2552_v58 }
 0x41a   :  { %2557 = vmatprep.subr.bf16.mxu1 %v2556_v13 }
 0x41d   :  { %2559 = vmatpush3.bf16.msra.mxu1 %v2556_v13 }
 0x41e   :  { %2561 = vmatprep.subr.bf16.mxu1 %v2560_v62 }
 0x421   :  { %2563 = vmatpush3.bf16.msra.mxu1 %v2560_v62 }
 0x422   :  { %2565 = vmatprep.subr.bf16.mxu1 %v2564_v19 }
 0x425   :  { %2567 = vmatpush3.bf16.msra.mxu1 %v2564_v19 }
 0x426   :  { %2569 = vmatprep.subr.bf16.mxu1 %v2568_v16 }
 0x428   :  { %2443 = vmatmul.mubr.msk.f32.vlgmr.msra.gmra.mrb[30].mxu1 %vm3423_vm7, %v2797_v61  ;;  %v126_v61 = vld [vmem:[%s3482_s12 + $0x10] sm:$0xff] }
 0x429   :  { %2571 = vmatpush3.bf16.msra.mxu1 %v2568_v16  ;;  %v2572_v39 = vpack.c.bf16 %v127_v22, %v126_v61 }
 0x42b   :  { %2573 = vmatprep.subr.bf16.mxu1 %v2572_v39 }
 0x42d   :  { %2575 = vmatpush3.bf16.msra.mxu1 %v2572_v39 }
 0x4db   :  { %v2409_v6 = vpop.f32.mrb[28].mxu1 }
 0x4dc   :  { %v1722_v32 = vpop.f32.mrb[29].mxu1 }
 0x4fb   :  { %v2444_v8 = vpop.f32.mrb[30].mxu1 }
 0x4fc   :  { %1861 = vperm.xlu1 %2668, %v2444_v8   ;;  %v1845_v10 = vpop.f32.mrb[31].mxu1 }
 0x4fd   :  { %1856 = vperm.xlu0 %2667, %v1845_v10  }
 0x57b   :  { %v1862_v2 = vpop.permute.xlu1 %1861 }
 0x57c   :  { %2765 = vrcp.f32 %v1862_v2  ;;  %v1857_v27 = vpop.permute.xlu0 %1856 }
 0x57d   :  { %2767 = vrcp.f32 %v1857_v27 }
 0x586   :  { %v2766_v4 = vpop.eup %2765 }
 0x587   :  { %v2768_v0 = vpop.eup %2767  ;;  %v1867_v17 = vmul.f32 %v2766_v4, %v2409_v6 }
 0x588   :  { %v1865_v3 = vmul.f32 %v2768_v0, %v1722_v32 }
 0x58a   :  { %2453 = vmatprep.mubr.msk.f32.mxu1 %vm372_vm0, %v1865_v3 }
 0x58b   :  { %2454 = vmatmul.mubr.msk.f32.vlgmr.msra.gmra.mrb[32].mxu1 %vm372_vm0, %v1867_v17 }
 0x65e   :  { %v2455_v20 = vpop.f32.mrb[32].mxu1 }
 0x65f   :  { %v1950_v43 = vmul.f32 2.0, %v2455_v20  ;;  %v1940_v41 = vpop.f32.mrb[33].mxu1 }
 0x660   :  { %v1949_v21 = vmul.f32 2.0, %v1940_v41 }
 0x661   :  { %v1952_v23 = vadd.f32 %v1950_v43, %v94_v18 }
 0x662   :  { %v1951_v24 = vadd.f32 %v1949_v21, %v93_v5 }
 0x663   :  { %1954 = vst.msk [vmem:[#allocation2 + $0x8] sm:$0xff] %vm372_vm0, %v1952_v23 }
 0x664   :  { %1953 = vst.msk [vmem:[#allocation2] sm:$0xff] %vm372_vm0, %v1951_v24 }
 0x665   :  { %2780 = shalt.err (!%p2777_p4)
}
 0x666   :  { %s2781_s1 = scalar_lea.hbm %s3483_s13, 256 }
 0x667   :  { %p2782_p5 = scmp.ne.s32.totalorder %s3483_s13, %s2781_s1  ;;  %p2785_p6 = scmp.lt.u32.totalorder %s2781_s1, %s3483_s13 }
 0x669   :  { %p2787_p7 = pnand %p2785_p6, %p2782_p5 }
 0x66b   :  { %2790 = shalt.err (!%p2787_p7)
}
 0x66c   :  { %s2799_s10 = smov 128   ;;  %s2800_s21 = smov 8  }
 0x66d   :  { %1966 = dma.vmem_to_hbm [thread:$0]  %s1961_s8, 256, %s3483_s13, [#allocation3], %s2799_s10, %s2799_s10, %s2800_s21  }
 0x66e   :  { %2791 = dma.done.wait [#allocation3], 256  }
 0x66f   :  { %2792 = vsyncadd [#allocation3], 4294967040 }
 0x670   :  { %1970 = vsyncpa [#allocation3], 1 }

</bundles_post_ra>
